<compile_context>
chip_gen: v7x
topology: tpu7x:2x2x1
jax: 0.10.0
libtpu: 0.0.40
codegen_flags: <defaults>
</compile_context>

<pallas_src>
import math

import jax
import jax.numpy as jnp
from jax import lax
from jax.experimental import pallas as pl
from jax.experimental.pallas import tpu as pltpu


def _round_up(x, m):
    return -(-x // m) * m


def _vmem_limits():
    """Generation-aware VMEM limits (v5e/v6e: 128 MiB physical, v7x: 64 MiB)."""
    try:
        cap = int(pltpu.get_tpu_info().vmem_capacity_bytes)
    except Exception:
        cap = 64 * 1024 * 1024                      # conservative (v7x-sized) fallback
    limit = min((cap * 3) // 4, 100 * 1024 * 1024)  # scoped VMEM limit for the kernel
    budget = (limit * 3) // 5                       # per-step working set; headroom for
    return limit, budget                            # Mosaic internal scratch


# ---------------------------------------------------------------------------
# Parameter / anchor preparation (plain JAX, runs once per model)
# ---------------------------------------------------------------------------
def init_rpn_params(key, in_channels, num_anchors, std=0.05):
    """RPNHead params in PyTorch layouts (conv3x3 OIHW, 1x1 heads (A,C,1,1)/(4A,C,1,1))."""
    k = jax.random.split(key, 6)
    C, A = in_channels, num_anchors
    return {
        "conv_w": std * jax.random.normal(k[0], (C, C, 3, 3), jnp.float32),
        "conv_b": std * jax.random.normal(k[1], (C,), jnp.float32),
        "cls_w": std * jax.random.normal(k[2], (A, C, 1, 1), jnp.float32),
        "cls_b": std * jax.random.normal(k[3], (A,), jnp.float32),
        "box_w": std * jax.random.normal(k[4], (4 * A, C, 1, 1), jnp.float32),
        "box_b": std * jax.random.normal(k[5], (4 * A,), jnp.float32),
    }


def pack_rpn_params(raw):
    """Rearrange + fuse + pad + bf16-cast the PyTorch-layout params for the kernel."""
    conv_w = raw["conv_w"]                                    # (Cout, Cin, 3, 3)
    C = conv_w.shape[0]
    A = raw["cls_w"].shape[0]
    Ap = _round_up(A, 8)                                      # vreg-aligned anchor rows

    # conv3x3 weights repacked for ONE K=9C matmul over the stacked tap views:
    # column block `tap = kh*3 + kw` holds that tap's (Cout, Cin) slice.
    w1cat = (jnp.transpose(conv_w, (2, 3, 0, 1))              # (kh, kw, Cout, Cin)
             .reshape(9, C, C).transpose(1, 0, 2).reshape(C, 9 * C)
             .astype(jnp.bfloat16))

    cls_w = raw["cls_w"][:, :, 0, 0]                          # (A, C)
    box_w = raw["box_w"][:, :, 0, 0]                          # (4A, C), row order a*4+k
    # Coordinate-major rows (k*Ap + a), zero-padded so dx/dy/dw/dh blocks start on
    # 8-sublane boundaries.
    box_w_cm = jnp.pad(box_w.reshape(A, 4, C).transpose(1, 0, 2),
                       ((0, 0), (0, Ap - A), (0, 0))).reshape(4 * Ap, C)
    box_b_cm = jnp.pad(raw["box_b"].reshape(A, 4).T,
                       ((0, 0), (0, Ap - A))).reshape(4 * Ap)
    cls_w_p = jnp.pad(cls_w, ((0, Ap - A), (0, 0)))
    cls_b_p = jnp.pad(raw["cls_b"], (0, Ap - A))
    # Fused 1x1 heads: rows [cls (Ap) | bbox coord-major (4*Ap)]  -> one MXU pass.
    wcb = jnp.concatenate([cls_w_p, box_w_cm], axis=0).astype(jnp.bfloat16)  # (5Ap, C)
    bcb = jnp.concatenate([cls_b_p, box_b_cm], axis=0).astype(jnp.float32)
    return {
        "w1cat": w1cat,
        "b1": raw["conv_b"].astype(jnp.float32).reshape(C, 1),
        "wcb": wcb,
        "bcb": bcb.reshape(5 * Ap, 1),
        "C": C,
        "A": A,
        "Ap": Ap,
    }


def generate_anchor_grid(H, W, stride=16.0, sizes=(32.0, 64.0, 128.0),
                         aspect_ratios=(1.0,)):
    """maskrcnn-style grid anchors as (H, W, A, 4); flatten gives row ((h*W+w)*A + a)."""
    base = []
    ctr = (stride - 1.0) / 2.0
    for size in sizes:
        for ar in aspect_ratios:
            w = size * math.sqrt(1.0 / ar)
            h = size * math.sqrt(ar)
            base.append([ctr - 0.5 * (w - 1.0), ctr - 0.5 * (h - 1.0),
                         ctr + 0.5 * (w - 1.0), ctr + 0.5 * (h - 1.0)])
    base = jnp.asarray(base, dtype=jnp.float32)                          # (A, 4)
    gx = jnp.broadcast_to(jnp.arange(W, dtype=jnp.float32)[None, :] * stride, (H, W))
    gy = jnp.broadcast_to(jnp.arange(H, dtype=jnp.float32)[:, None] * stride, (H, W))
    shifts = jnp.stack([gx, gy, gx, gy], axis=-1)                        # (H, W, 4)
    return shifts[:, :, None, :] + base[None, None, :, :]                # (H, W, A, 4)


def _anchors_for_kernel(anchor_grid, padded_h, tile_h, Ap):
    """(H, W, A, 4) -> (T, 4*Ap, tile_h*(W+2)): coord-major rows, lane-dense cols."""
    H, W, A, _ = anchor_grid.shape
    wp2 = W + 2
    a = jnp.pad(anchor_grid, ((0, padded_h - H), (0, 2), (0, Ap - A), (0, 0)))
    a = jnp.transpose(a, (3, 2, 0, 1)).reshape(4 * Ap, padded_h, wp2)    # rows k*Ap + a
    T = padded_h // tile_h
    a = a.reshape(4 * Ap, T, tile_h, wp2)
    return jnp.transpose(a, (1, 0, 2, 3)).reshape(T, 4 * Ap, tile_h * wp2)


def _padded_tile_len(tile_h, wp2):
    # +2 so the furthest conv tap (kh=kw=2) of the last (garbage, later-dropped)
    # output lane stays in bounds; rounded up to 128 lanes for aligned loads.
    return _round_up((tile_h + 2) * wp2 + 2, 128)


def _tile_input(x_nchw, tile_h, padded_h, lp):
    """NCHW -> (N, T, C, lp) bf16 overlapping flattened row tiles (1-row conv halo)."""
    N, C, H, W = x_nchw.shape
    wp2 = W + 2
    xp = jnp.pad(x_nchw, ((0, 0), (0, 0), (1, 1 + padded_h - H), (1, 1)))
    xp = xp.astype(jnp.bfloat16)
    T = padded_h // tile_h
    tiles = [xp[:, :, i * tile_h:i * tile_h + tile_h + 2, :] for i in range(T)]
    xt = jnp.stack(tiles, axis=1).reshape(N, T, C, (tile_h + 2) * wp2)
    extra = lp - (tile_h + 2) * wp2
    if extra:
        xt = jnp.pad(xt, ((0, 0), (0, 0), (0, 0), (0, extra)))
    return xt


def _per_tile_vmem_bytes(tile_h, W, C, Ap):
    """Per-grid-step working set, incl. double-buffered I/O and in-kernel temporaries."""
    wp2 = W + 2
    lv = tile_h * wp2
    lp = _padded_tile_len(tile_h, wp2)
    in_b = C * lp * 2                                   # bf16 input tile
    anch_b = 4 * Ap * lv * 4                            # f32 anchors
    w_b = (9 * C * C + 5 * Ap * C) * 2 + (C + 5 * Ap) * 4
    out_b = 10 * Ap * lv * 4                            # obj + scores + deltas + props
    tmp_b = (9 * C * lv * 2                             # stacked tap slab (bf16)
             + C * lv * (4 + 2)                         # conv acc f32 + relu bf16
             + 5 * Ap * lv * 4                          # fused head output f32
             + 12 * Ap * lv * 4)                        # decode temporaries
    return 2 * (in_b + anch_b + w_b + out_b) + tmp_b


def _choose_row_tile(H, W, C, Ap, budget_bytes, batch=1):
    """Pick tile_h minimizing computed rows; prefer lane-aligned lv and >=2 grid steps."""
    h8 = _round_up(H, 8)
    wp2 = W + 2
    best = None
    for cand in range(8, h8 + 1, 8):
        if _per_tile_vmem_bytes(cand, W, C, Ap) > budget_bytes:
            continue
        padded_h = _round_up(H, cand)
        T = padded_h // cand
        mc_penalty = 1 if (batch * T < 2) else 0        # keep both v7x TCs busy
        lane_aligned = 0 if (cand * wp2) % 128 == 0 else 1
        key = (padded_h, mc_penalty, lane_aligned, -cand)
        if best is None or key < best[0]:
            best = (key, cand)
    return 8 if best is None else best[1]


# ---------------------------------------------------------------------------
# Fused Pallas forward: RPN head (conv3x3 + ReLU + fused 1x1s) + decode + sigmoid
# ---------------------------------------------------------------------------
def rpn_module_forward(features_nchw, raw_params, *, stride=16.0,
                       sizes=(32.0, 64.0, 128.0), aspect_ratios=(1.0,),
                       row_tile=None, return_nchw=True):
    """Eval-path RPNModule.forward for a single (non-FPN) feature level.

    Returns (proposals (N, R, 4), scores (N, R),
             objectness (N, A, H, W) or None, box_regression (N, 4A, H, W) or None),
    with R = H*W*A ordered ((h*W + w)*A + a) like maskrcnn's permute_and_flatten.
    """
    N, C, H, W = features_nchw.shape
    p = pack_rpn_params(raw_params)
    A, Ap = p["A"], p["Ap"]
    assert p["C"] == C

    vmem_limit, vmem_budget = _vmem_limits()
    tile_h = (row_tile if row_tile is not None
              else _choose_row_tile(H, W, C, Ap, vmem_budget, batch=N))
    padded_h = _round_up(H, tile_h)
    T = padded_h // tile_h
    wp2 = W + 2
    lv = tile_h * wp2                   # non-halo lanes per tile (lane-dense out width)
    lp = _padded_tile_len(tile_h, wp2)  # flattened padded row-tile length (lanes)

    xt = _tile_input(features_nchw, tile_h, padded_h, lp)                # (N, T, C, lp)
    anchor_grid = generate_anchor_grid(H, W, stride, sizes, aspect_ratios)
    anch_t = _anchors_for_kernel(anchor_grid, padded_h, tile_h, Ap)      # (T, 4Ap, lv)

    bbox_clip = math.log(1000.0 / 16.0)

    def kernel(x_ref, w1_ref, b1_ref, wcb_ref, bcb_ref, anch_ref,
               obj_ref, box_ref, prop_ref, scr_ref):
        # x_ref   : (C, lp)    bf16  one padded row-tile, channels on sublanes,
        #                            flattened (rows, padded width) on lanes.
        # w1_ref  : (C, 9C)    bf16  conv3x3 repacked for one K=9C matmul.
        # b1_ref  : (C, 1)     f32
        # wcb_ref : (5Ap, C)   bf16  fused 1x1 heads [cls (Ap) | bbox coord-major]
        # bcb_ref : (5Ap, 1)   f32
        # anch_ref: (4Ap, lv)  f32   anchors, coord-major rows k*Ap+a, same lane order
        # obj_ref : (Ap, lv)   f32   objectness logits
        # box_ref : (4Ap, lv)  f32   raw bbox deltas (coord-major)
        # prop_ref: (4Ap, lv)  f32   decoded proposals [x1;y1;x2;y2] (coord-major)
        # scr_ref : (Ap, lv)   f32   sigmoid(objectness)
        x = x_ref[...]                                          # (C, lp) bf16

        # 3x3 conv: stack the 9 lane-shifted tap views along the contraction axis and
        # run ONE K=9C MXU matmul -- accumulation stays in the MXU f32 accumulator.
        xcat = jnp.concatenate(
            [x[:, kh * wp2 + kw: kh * wp2 + kw + lv]
             for kh in range(3) for kw in range(3)], axis=0)            # (9C, lv)
        acc = jnp.dot(w1_ref[...], xcat, preferred_element_type=jnp.float32)  # (C, lv)
        t = jnp.maximum(acc + b1_ref[...], 0.0).astype(jnp.bfloat16)

        # Fused 1x1 heads: one MXU pass yields cls logits and bbox deltas.
        ob = jnp.dot(wcb_ref[...], t,
                     preferred_element_type=jnp.float32) + bcb_ref[...]  # (5Ap, lv)
        obj = ob[:Ap]
        d = ob[Ap:]
        obj_ref[...] = obj
        scr_ref[...] = 1.0 / (1.0 + jnp.exp(-obj))      # sigmoid on EUP, in-kernel
        box_ref[...] = d

        # BoxCoder.decode (weights=(1,1,1,1)) fused into the epilogue (VPU/EUP).
        a = anch_ref[...]
        x1, y1, x2, y2 = a[:Ap], a[Ap:2 * Ap], a[2 * Ap:3 * Ap], a[3 * Ap:]
        dx, dy = d[:Ap], d[Ap:2 * Ap]
        dw = jnp.minimum(d[2 * Ap:3 * Ap], bbox_clip)
        dh = jnp.minimum(d[3 * Ap:], bbox_clip)
        wa = x2 - x1 + 1.0
        ha = y2 - y1 + 1.0
        cxa = x1 + 0.5 * wa
        cya = y1 + 0.5 * ha
        pcx = dx * wa + cxa
        pcy = dy * ha + cya
        pw = jnp.exp(dw) * wa
        ph = jnp.exp(dh) * ha
        prop_ref[...] = jnp.concatenate(
            [pcx - 0.5 * pw, pcy - 0.5 * ph,
             pcx + 0.5 * pw - 1.0, pcy + 0.5 * ph - 1.0], axis=0)

    # Grid (T, N): the anchor block index only changes on the OUTER axis, so its DMA
    # is issued once per row tile (not per image); weight blocks are fetched once.
    obj_t, box_t, prop_t, scr_t = pl.pallas_call(
        kernel,
        out_shape=(jax.ShapeDtypeStruct((N, T, Ap, lv), jnp.float32),
                   jax.ShapeDtypeStruct((N, T, 4 * Ap, lv), jnp.float32),
                   jax.ShapeDtypeStruct((N, T, 4 * Ap, lv), jnp.float32),
                   jax.ShapeDtypeStruct((N, T, Ap, lv), jnp.float32)),
        grid_spec=pltpu.PrefetchScalarGridSpec(
            num_scalar_prefetch=0,
            grid=(T, N),
            in_specs=[
                pl.BlockSpec((None, None, C, lp), lambda i, n: (n, i, 0, 0)),
                pl.BlockSpec((C, 9 * C), lambda i, n: (0, 0)),
                pl.BlockSpec((C, 1), lambda i, n: (0, 0)),
                pl.BlockSpec((5 * Ap, C), lambda i, n: (0, 0)),
                pl.BlockSpec((5 * Ap, 1), lambda i, n: (0, 0)),
                pl.BlockSpec((None, 4 * Ap, lv), lambda i, n: (i, 0, 0)),
            ],
            out_specs=[
                pl.BlockSpec((None, None, Ap, lv), lambda i, n: (n, i, 0, 0)),
                pl.BlockSpec((None, None, 4 * Ap, lv), lambda i, n: (n, i, 0, 0)),
                pl.BlockSpec((None, None, 4 * Ap, lv), lambda i, n: (n, i, 0, 0)),
                pl.BlockSpec((None, None, Ap, lv), lambda i, n: (n, i, 0, 0)),
            ]),
        compiler_params=pltpu.CompilerParams(
            dimension_semantics=("parallel", "parallel"),
            vmem_limit_bytes=vmem_limit),
    )(xt, p["w1cat"], p["b1"], p["wcb"], p["bcb"], anch_t)

    # --- Layout plumbing back to PyTorch conventions (wrapper-side reshapes only). ---
    def untile(x, rows):
        # (N, T, rows, lv) -> (N, H, W, rows); drops halo/padding rows and columns.
        x = x.reshape(N, T, rows, tile_h, wp2)
        x = jnp.transpose(x, (0, 1, 3, 4, 2)).reshape(N, padded_h, wp2, rows)
        return x[:, :H, :W, :]

    scores = untile(scr_t, Ap)[..., :A].reshape(N, -1)                   # (N, R)

    prop = untile(prop_t, 4 * Ap).reshape(N, H, W, 4, Ap)[..., :A]       # (k, a)
    proposals = jnp.transpose(prop, (0, 1, 2, 4, 3)).reshape(N, H * W * A, 4)

    if not return_nchw:
        return proposals, scores, None, None

    # NCHW head outputs, produced purely for API fidelity with the PyTorch module
    # (not consumed by the proposal/score path); gated behind `return_nchw`.
    obj_hwa = untile(obj_t, Ap)[..., :A]                                 # (N, H, W, A)
    objectness = jnp.transpose(obj_hwa, (0, 3, 1, 2))                    # (N, A, H, W)
    box = untile(box_t, 4 * Ap).reshape(N, H, W, 4, Ap)[..., :A]
    box_regression = jnp.transpose(box, (0, 4, 3, 1, 2)).reshape(N, 4 * A, H, W)

    return proposals, scores, objectness, box_regression


# ---------------------------------------------------------------------------
# Pure-JAX (XLA) reference of the same forward, for the numeric self-check
# ---------------------------------------------------------------------------
def rpn_reference(features_nchw, raw_params, *, stride=16.0,
                  sizes=(32.0, 64.0, 128.0), aspect_ratios=(1.0,)):
    N, C, H, W = features_nchw.shape
    A = raw_params["cls_w"].shape[0]
    f32 = jnp.float32
    x = features_nchw.astype(jnp.bfloat16).astype(f32)
    cw = raw_params["conv_w"].astype(jnp.bfloat16).astype(f32)
    t = lax.conv_general_dilated(x, cw, (1, 1), ((1, 1), (1, 1)),
                                 dimension_numbers=("NCHW", "OIHW", "NCHW"))
    t = jnp.maximum(t + raw_params["conv_b"][None, :, None, None], 0.0)
    t = t.astype(jnp.bfloat16).astype(f32)
    cls_w = raw_params["cls_w"][:, :, 0, 0].astype(jnp.bfloat16).astype(f32)
    box_w = raw_params["box_w"][:, :, 0, 0].astype(jnp.bfloat16).astype(f32)
    obj = jnp.einsum("nchw,ac->nahw", t, cls_w) + raw_params["cls_b"][None, :, None, None]
    box = jnp.einsum("nchw,dc->ndhw", t, box_w) + raw_params["box_b"][None, :, None, None]

    anchors = generate_anchor_grid(H, W, stride, sizes, aspect_ratios).reshape(-1, 4)
    deltas = box.reshape(N, A, 4, H, W).transpose(0, 3, 4, 1, 2).reshape(N, -1, 4)
    scores = jax.nn.sigmoid(
        obj.reshape(N, A, 1, H, W).transpose(0, 3, 4, 1, 2).reshape(N, -1))

    widths = anchors[:, 2] - anchors[:, 0] + 1.0
    heights = anchors[:, 3] - anchors[:, 1] + 1.0
    ctr_x = anchors[:, 0] + 0.5 * widths
    ctr_y = anchors[:, 1] + 0.5 * heights
    clip = math.log(1000.0 / 16.0)
    dx, dy = deltas[..., 0], deltas[..., 1]
    dw = jnp.minimum(deltas[..., 2], clip)
    dh = jnp.minimum(deltas[..., 3], clip)
    pcx = dx * widths + ctr_x
    pcy = dy * heights + ctr_y
    pw = jnp.exp(dw) * widths
    ph = jnp.exp(dh) * heights
    proposals = jnp.stack([pcx - 0.5 * pw, pcy - 0.5 * ph,
                           pcx + 0.5 * pw - 1.0, pcy + 0.5 * ph - 1.0], axis=-1)
    return proposals, scores, obj, box


if __name__ == "__main__":
    N, C, H, W = 2, 32, 16, 16
    sizes = (32.0, 64.0, 128.0)
    aspect_ratios = (1.0,)
    stride = 16.0
    A = len(sizes) * len(aspect_ratios)

    key = jax.random.PRNGKey(0)
    kx, kp = jax.random.split(key)
    features = jax.random.normal(kx, (N, C, H, W), jnp.float32)   # NCHW like PyTorch
    raw_params = init_rpn_params(kp, C, A)

    # row_tile=8 forces T=2 row tiles at this small H so the halo-tiling path runs.
    proposals, scores, objectness, box_reg = rpn_module_forward(
        features, raw_params, stride=stride, sizes=sizes,
        aspect_ratios=aspect_ratios, row_tile=8, return_nchw=True)
    jax.block_until_ready((proposals, scores, objectness, box_reg))

    R = H * W * A
    assert proposals.shape == (N, R, 4)
    assert scores.shape == (N, R)
    assert objectness.shape == (N, A, H, W)
    assert box_reg.shape == (N, 4 * A, H, W)

    ref_p, ref_s, ref_o, ref_b = rpn_reference(
        features, raw_params, stride=stride, sizes=sizes, aspect_ratios=aspect_ratios)
    assert jnp.allclose(proposals, ref_p, rtol=5e-3, atol=0.5), \
        ("proposals max|diff|", float(jnp.max(jnp.abs(proposals - ref_p))))
    assert jnp.allclose(scores, ref_s, rtol=5e-3, atol=5e-3), \
        ("scores max|diff|", float(jnp.max(jnp.abs(scores - ref_s))))
    assert jnp.allclose(objectness, ref_o, rtol=5e-3, atol=1e-2), \
        ("objectness max|diff|", float(jnp.max(jnp.abs(objectness - ref_o))))
    assert jnp.allclose(box_reg, ref_b, rtol=5e-3, atol=1e-2), \
        ("box_reg max|diff|", float(jnp.max(jnp.abs(box_reg - ref_b))))

    print("KERNEL_OK")
</pallas_src>

<mosaic_0001>
module attributes {stable_mosaic.version = 11 : i64} {
  func.func @kernel(%arg0: i32, %arg1: i32, %arg2: memref<1x1x32x256xbf16, #tpu.memory_space<vmem>>, %arg3: memref<32x288xbf16, #tpu.memory_space<vmem>>, %arg4: memref<32x1xf32, #tpu.memory_space<vmem>>, %arg5: memref<40x32xbf16, #tpu.memory_space<vmem>>, %arg6: memref<40x1xf32, #tpu.memory_space<vmem>>, %arg7: memref<1x32x144xf32, #tpu.memory_space<vmem>>, %arg8: memref<1x1x8x144xf32, #tpu.memory_space<vmem>>, %arg9: memref<1x1x32x144xf32, #tpu.memory_space<vmem>>, %arg10: memref<1x1x32x144xf32, #tpu.memory_space<vmem>>, %arg11: memref<1x1x8x144xf32, #tpu.memory_space<vmem>>) attributes {dimension_semantics = [#tpu.dimension_semantics<parallel>, #tpu.dimension_semantics<parallel>], iteration_bounds = array<i64: 2, 2>, scalar_prefetch = 0 : i64, scratch_operands = 0 : i64, tpu.core_type = #tpu.core_type<tc>, window_params = [{transform_indices = @transform_0, window_bounds = array<i64: 1, 1, 32, 256>}, {pipeline_mode = #tpu.pipeline_mode<synchronous>, transform_indices = @transform_1, window_bounds = array<i64: 32, 288>}, {pipeline_mode = #tpu.pipeline_mode<synchronous>, transform_indices = @transform_2, window_bounds = array<i64: 32, 1>}, {pipeline_mode = #tpu.pipeline_mode<synchronous>, transform_indices = @transform_3, window_bounds = array<i64: 40, 32>}, {pipeline_mode = #tpu.pipeline_mode<synchronous>, transform_indices = @transform_4, window_bounds = array<i64: 40, 1>}, {transform_indices = @transform_5, window_bounds = array<i64: 1, 32, 144>}, {transform_indices = @transform_6, window_bounds = array<i64: 1, 1, 8, 144>}, {transform_indices = @transform_7, window_bounds = array<i64: 1, 1, 32, 144>}, {transform_indices = @transform_8, window_bounds = array<i64: 1, 1, 32, 144>}, {transform_indices = @transform_9, window_bounds = array<i64: 1, 1, 8, 144>}]} {
    %c0 = arith.constant 0 : index
    %c0_0 = arith.constant 0 : index
    %c0_1 = arith.constant 0 : index
    %c0_2 = arith.constant 0 : index
    %0 = vector.load %arg2[%c0, %c0_0, %c0_1, %c0_2] : memref<1x1x32x256xbf16, #tpu.memory_space<vmem>>, vector<1x1x32x256xbf16>
    %1 = vector.shape_cast %0 : vector<1x1x32x256xbf16> to vector<32x256xbf16>
    %2 = vector.extract_strided_slice %1 {offsets = [0, 0], sizes = [32, 144], strides = [1, 1]} : vector<32x256xbf16> to vector<32x144xbf16>
    %3 = vector.extract_strided_slice %1 {offsets = [0, 1], sizes = [32, 144], strides = [1, 1]} : vector<32x256xbf16> to vector<32x144xbf16>
    %4 = vector.extract_strided_slice %1 {offsets = [0, 2], sizes = [32, 144], strides = [1, 1]} : vector<32x256xbf16> to vector<32x144xbf16>
    %5 = vector.extract_strided_slice %1 {offsets = [0, 18], sizes = [32, 144], strides = [1, 1]} : vector<32x256xbf16> to vector<32x144xbf16>
    %6 = vector.extract_strided_slice %1 {offsets = [0, 19], sizes = [32, 144], strides = [1, 1]} : vector<32x256xbf16> to vector<32x144xbf16>
    %7 = vector.extract_strided_slice %1 {offsets = [0, 20], sizes = [32, 144], strides = [1, 1]} : vector<32x256xbf16> to vector<32x144xbf16>
    %8 = vector.extract_strided_slice %1 {offsets = [0, 36], sizes = [32, 144], strides = [1, 1]} : vector<32x256xbf16> to vector<32x144xbf16>
    %9 = vector.extract_strided_slice %1 {offsets = [0, 37], sizes = [32, 144], strides = [1, 1]} : vector<32x256xbf16> to vector<32x144xbf16>
    %10 = vector.extract_strided_slice %1 {offsets = [0, 38], sizes = [32, 144], strides = [1, 1]} : vector<32x256xbf16> to vector<32x144xbf16>
    %11 = tpu.concatenate %2, %3, %4, %5, %6, %7, %8, %9, %10 in 0 : vector<32x144xbf16>, vector<32x144xbf16>, vector<32x144xbf16>, vector<32x144xbf16>, vector<32x144xbf16>, vector<32x144xbf16>, vector<32x144xbf16>, vector<32x144xbf16>, vector<32x144xbf16> -> vector<288x144xbf16>
    %c0_3 = arith.constant 0 : index
    %c0_4 = arith.constant 0 : index
    %12 = vector.load %arg3[%c0_3, %c0_4] : memref<32x288xbf16, #tpu.memory_space<vmem>>, vector<32x288xbf16>
    %cst = arith.constant dense<0.000000e+00> : vector<32x144xf32>
    %13 = tpu.matmul %12, %11, %cst {dimension_numbers = #tpu.dot_dimension_numbers<[1], [0], [0], [1], [0, 0, 1, 1], [], []>} : vector<32x288xbf16>, vector<288x144xbf16>, vector<32x144xf32> -> vector<32x144xf32>
    %c0_5 = arith.constant 0 : index
    %c0_6 = arith.constant 0 : index
    %14 = vector.load %arg4[%c0_5, %c0_6] : memref<32x1xf32, #tpu.memory_space<vmem>>, vector<32x1xf32>
    %15 = vector.broadcast %14 : vector<32x1xf32> to vector<32x144xf32>
    %16 = arith.addf %13, %15 : vector<32x144xf32>
    %cst_7 = arith.constant 0.000000e+00 : f32
    %17 = vector.broadcast %cst_7 : f32 to vector<32x144xf32>
    %18 = arith.maximumf %16, %17 : vector<32x144xf32>
    %19 = arith.truncf %18 : vector<32x144xf32> to vector<32x144xbf16>
    %c0_8 = arith.constant 0 : index
    %c0_9 = arith.constant 0 : index
    %20 = vector.load %arg5[%c0_8, %c0_9] : memref<40x32xbf16, #tpu.memory_space<vmem>>, vector<40x32xbf16>
    %cst_10 = arith.constant dense<0.000000e+00> : vector<40x144xf32>
    %21 = tpu.matmul %20, %19, %cst_10 {dimension_numbers = #tpu.dot_dimension_numbers<[1], [0], [0], [1], [0, 0, 1, 1], [], []>} : vector<40x32xbf16>, vector<32x144xbf16>, vector<40x144xf32> -> vector<40x144xf32>
    %c0_11 = arith.constant 0 : index
    %c0_12 = arith.constant 0 : index
    %22 = vector.load %arg6[%c0_11, %c0_12] : memref<40x1xf32, #tpu.memory_space<vmem>>, vector<40x1xf32>
    %23 = vector.broadcast %22 : vector<40x1xf32> to vector<40x144xf32>
    %24 = arith.addf %21, %23 : vector<40x144xf32>
    %25 = vector.extract_strided_slice %24 {offsets = [0, 0], sizes = [8, 144], strides = [1, 1]} : vector<40x144xf32> to vector<8x144xf32>
    %26 = vector.extract_strided_slice %24 {offsets = [8, 0], sizes = [32, 144], strides = [1, 1]} : vector<40x144xf32> to vector<32x144xf32>
    %c0_13 = arith.constant 0 : index
    %c0_14 = arith.constant 0 : index
    %c0_15 = arith.constant 0 : index
    %c0_16 = arith.constant 0 : index
    %27 = vector.load %arg8[%c0_13, %c0_14, %c0_15, %c0_16] : memref<1x1x8x144xf32, #tpu.memory_space<vmem>>, vector<1x1x8x144xf32>
    %28 = vector.shape_cast %27 : vector<1x1x8x144xf32> to vector<8x144xf32>
    %29 = vector.shape_cast %25 : vector<8x144xf32> to vector<1x1x8x144xf32>
    tpu.vector_store %arg8[%c0_13, %c0_14, %c0_15, %c0_16], %29 {strides = array<i32>} : memref<1x1x8x144xf32, #tpu.memory_space<vmem>>, vector<1x1x8x144xf32>,
    %cst_17 = arith.constant 0.000000e+00 : f32
    %30 = vector.broadcast %cst_17 : f32 to vector<8x144xf32>
    %31 = arith.subf %30, %25 : vector<8x144xf32>
    %32 = math.exp %31 : vector<8x144xf32>
    %cst_18 = arith.constant 1.000000e+00 : f32
    %33 = vector.broadcast %cst_18 : f32 to vector<8x144xf32>
    %34 = arith.addf %33, %32 : vector<8x144xf32>
    %cst_19 = arith.constant 1.000000e+00 : f32
    %35 = vector.broadcast %cst_19 : f32 to vector<8x144xf32>
    %36 = arith.divf %35, %34 : vector<8x144xf32>
    %c0_20 = arith.constant 0 : index
    %c0_21 = arith.constant 0 : index
    %c0_22 = arith.constant 0 : index
    %c0_23 = arith.constant 0 : index
    %37 = vector.load %arg11[%c0_20, %c0_21, %c0_22, %c0_23] : memref<1x1x8x144xf32, #tpu.memory_space<vmem>>, vector<1x1x8x144xf32>
    %38 = vector.shape_cast %37 : vector<1x1x8x144xf32> to vector<8x144xf32>
    %39 = vector.shape_cast %36 : vector<8x144xf32> to vector<1x1x8x144xf32>
    tpu.vector_store %arg11[%c0_20, %c0_21, %c0_22, %c0_23], %39 {strides = array<i32>} : memref<1x1x8x144xf32, #tpu.memory_space<vmem>>, vector<1x1x8x144xf32>,
    %c0_24 = arith.constant 0 : index
    %c0_25 = arith.constant 0 : index
    %c0_26 = arith.constant 0 : index
    %c0_27 = arith.constant 0 : index
    %40 = vector.load %arg9[%c0_24, %c0_25, %c0_26, %c0_27] : memref<1x1x32x144xf32, #tpu.memory_space<vmem>>, vector<1x1x32x144xf32>
    %41 = vector.shape_cast %40 : vector<1x1x32x144xf32> to vector<32x144xf32>
    %42 = vector.shape_cast %26 : vector<32x144xf32> to vector<1x1x32x144xf32>
    tpu.vector_store %arg9[%c0_24, %c0_25, %c0_26, %c0_27], %42 {strides = array<i32>} : memref<1x1x32x144xf32, #tpu.memory_space<vmem>>, vector<1x1x32x144xf32>,
    %c0_28 = arith.constant 0 : index
    %c0_29 = arith.constant 0 : index
    %c0_30 = arith.constant 0 : index
    %43 = vector.load %arg7[%c0_28, %c0_29, %c0_30] : memref<1x32x144xf32, #tpu.memory_space<vmem>>, vector<1x32x144xf32>
    %44 = vector.shape_cast %43 : vector<1x32x144xf32> to vector<32x144xf32>
    %45 = vector.extract_strided_slice %44 {offsets = [0, 0], sizes = [8, 144], strides = [1, 1]} : vector<32x144xf32> to vector<8x144xf32>
    %46 = vector.extract_strided_slice %44 {offsets = [8, 0], sizes = [8, 144], strides = [1, 1]} : vector<32x144xf32> to vector<8x144xf32>
    %47 = vector.extract_strided_slice %44 {offsets = [16, 0], sizes = [8, 144], strides = [1, 1]} : vector<32x144xf32> to vector<8x144xf32>
    %48 = vector.extract_strided_slice %44 {offsets = [24, 0], sizes = [8, 144], strides = [1, 1]} : vector<32x144xf32> to vector<8x144xf32>
    %49 = vector.extract_strided_slice %26 {offsets = [0, 0], sizes = [8, 144], strides = [1, 1]} : vector<32x144xf32> to vector<8x144xf32>
    %50 = vector.extract_strided_slice %26 {offsets = [8, 0], sizes = [8, 144], strides = [1, 1]} : vector<32x144xf32> to vector<8x144xf32>
    %51 = vector.extract_strided_slice %26 {offsets = [16, 0], sizes = [8, 144], strides = [1, 1]} : vector<32x144xf32> to vector<8x144xf32>
    %cst_31 = arith.constant 4.13516665 : f32
    %52 = vector.broadcast %cst_31 : f32 to vector<8x144xf32>
    %53 = arith.minimumf %51, %52 : vector<8x144xf32>
    %54 = vector.extract_strided_slice %26 {offsets = [24, 0], sizes = [8, 144], strides = [1, 1]} : vector<32x144xf32> to vector<8x144xf32>
    %cst_32 = arith.constant 4.13516665 : f32
    %55 = vector.broadcast %cst_32 : f32 to vector<8x144xf32>
    %56 = arith.minimumf %54, %55 : vector<8x144xf32>
    %57 = arith.subf %47, %45 : vector<8x144xf32>
    %cst_33 = arith.constant 1.000000e+00 : f32
    %58 = vector.broadcast %cst_33 : f32 to vector<8x144xf32>
    %59 = arith.addf %57, %58 : vector<8x144xf32>
    %60 = arith.subf %48, %46 : vector<8x144xf32>
    %cst_34 = arith.constant 1.000000e+00 : f32
    %61 = vector.broadcast %cst_34 : f32 to vector<8x144xf32>
    %62 = arith.addf %60, %61 : vector<8x144xf32>
    %cst_35 = arith.constant 5.000000e-01 : f32
    %63 = vector.broadcast %cst_35 : f32 to vector<8x144xf32>
    %64 = arith.mulf %63, %59 : vector<8x144xf32>
    %65 = arith.addf %45, %64 : vector<8x144xf32>
    %cst_36 = arith.constant 5.000000e-01 : f32
    %66 = vector.broadcast %cst_36 : f32 to vector<8x144xf32>
    %67 = arith.mulf %66, %62 : vector<8x144xf32>
    %68 = arith.addf %46, %67 : vector<8x144xf32>
    %69 = arith.mulf %49, %59 : vector<8x144xf32>
    %70 = arith.addf %69, %65 : vector<8x144xf32>
    %71 = arith.mulf %50, %62 : vector<8x144xf32>
    %72 = arith.addf %71, %68 : vector<8x144xf32>
    %73 = math.exp %53 : vector<8x144xf32>
    %74 = arith.mulf %73, %59 : vector<8x144xf32>
    %75 = math.exp %56 : vector<8x144xf32>
    %76 = arith.mulf %75, %62 : vector<8x144xf32>
    %cst_37 = arith.constant 5.000000e-01 : f32
    %77 = vector.broadcast %cst_37 : f32 to vector<8x144xf32>
    %78 = arith.mulf %77, %74 : vector<8x144xf32>
    %79 = arith.subf %70, %78 : vector<8x144xf32>
    %cst_38 = arith.constant 5.000000e-01 : f32
    %80 = vector.broadcast %cst_38 : f32 to vector<8x144xf32>
    %81 = arith.mulf %80, %76 : vector<8x144xf32>
    %82 = arith.subf %72, %81 : vector<8x144xf32>
    %cst_39 = arith.constant 5.000000e-01 : f32
    %83 = vector.broadcast %cst_39 : f32 to vector<8x144xf32>
    %84 = arith.mulf %83, %74 : vector<8x144xf32>
    %85 = arith.addf %70, %84 : vector<8x144xf32>
    %cst_40 = arith.constant 1.000000e+00 : f32
    %86 = vector.broadcast %cst_40 : f32 to vector<8x144xf32>
    %87 = arith.subf %85, %86 : vector<8x144xf32>
    %cst_41 = arith.constant 5.000000e-01 : f32
    %88 = vector.broadcast %cst_41 : f32 to vector<8x144xf32>
    %89 = arith.mulf %88, %76 : vector<8x144xf32>
    %90 = arith.addf %72, %89 : vector<8x144xf32>
    %cst_42 = arith.constant 1.000000e+00 : f32
    %91 = vector.broadcast %cst_42 : f32 to vector<8x144xf32>
    %92 = arith.subf %90, %91 : vector<8x144xf32>
    %93 = tpu.concatenate %79, %82, %87, %92 in 0 : vector<8x144xf32>, vector<8x144xf32>, vector<8x144xf32>, vector<8x144xf32> -> vector<32x144xf32>
    %c0_43 = arith.constant 0 : index
    %c0_44 = arith.constant 0 : index
    %c0_45 = arith.constant 0 : index
    %c0_46 = arith.constant 0 : index
    %94 = vector.load %arg10[%c0_43, %c0_44, %c0_45, %c0_46] : memref<1x1x32x144xf32, #tpu.memory_space<vmem>>, vector<1x1x32x144xf32>
    %95 = vector.shape_cast %94 : vector<1x1x32x144xf32> to vector<32x144xf32>
    %96 = vector.shape_cast %93 : vector<32x144xf32> to vector<1x1x32x144xf32>
    tpu.vector_store %arg10[%c0_43, %c0_44, %c0_45, %c0_46], %96 {strides = array<i32>} : memref<1x1x32x144xf32, #tpu.memory_space<vmem>>, vector<1x1x32x144xf32>,
    return
  }
  func.func @transform_0(%arg0: i32, %arg1: i32) -> (i32, i32, i32, i32) {
    %c0_i32 = arith.constant 0 : i32
    %c0_i32_0 = arith.constant 0 : i32
    %c0_i32_1 = arith.constant 0 : i32
    return %arg1, %arg0, %c0_i32, %c0_i32_0 : i32, i32, i32, i32
  }
  func.func @transform_1(%arg0: i32, %arg1: i32) -> (i32, i32) {
    %c0_i32 = arith.constant 0 : i32
    %c0_i32_0 = arith.constant 0 : i32
    %c0_i32_1 = arith.constant 0 : i32
    return %c0_i32, %c0_i32_0 : i32, i32
  }
  func.func @transform_2(%arg0: i32, %arg1: i32) -> (i32, i32) {
    %c0_i32 = arith.constant 0 : i32
    %c0_i32_0 = arith.constant 0 : i32
    %c0_i32_1 = arith.constant 0 : i32
    return %c0_i32, %c0_i32_0 : i32, i32
  }
  func.func @transform_3(%arg0: i32, %arg1: i32) -> (i32, i32) {
    %c0_i32 = arith.constant 0 : i32
    %c0_i32_0 = arith.constant 0 : i32
    %c0_i32_1 = arith.constant 0 : i32
    return %c0_i32, %c0_i32_0 : i32, i32
  }
  func.func @transform_4(%arg0: i32, %arg1: i32) -> (i32, i32) {
    %c0_i32 = arith.constant 0 : i32
    %c0_i32_0 = arith.constant 0 : i32
    %c0_i32_1 = arith.constant 0 : i32
    return %c0_i32, %c0_i32_0 : i32, i32
  }
  func.func @transform_5(%arg0: i32, %arg1: i32) -> (i32, i32, i32) {
    %c0_i32 = arith.constant 0 : i32
    %c0_i32_0 = arith.constant 0 : i32
    %c0_i32_1 = arith.constant 0 : i32
    return %arg0, %c0_i32, %c0_i32_0 : i32, i32, i32
  }
  func.func @transform_6(%arg0: i32, %arg1: i32) -> (i32, i32, i32, i32) {
    %c0_i32 = arith.constant 0 : i32
    %c0_i32_0 = arith.constant 0 : i32
    %c0_i32_1 = arith.constant 0 : i32
    return %arg1, %arg0, %c0_i32, %c0_i32_0 : i32, i32, i32, i32
  }
  func.func @transform_7(%arg0: i32, %arg1: i32) -> (i32, i32, i32, i32) {
    %c0_i32 = arith.constant 0 : i32
    %c0_i32_0 = arith.constant 0 : i32
    %c0_i32_1 = arith.constant 0 : i32
    return %arg1, %arg0, %c0_i32, %c0_i32_0 : i32, i32, i32, i32
  }
  func.func @transform_8(%arg0: i32, %arg1: i32) -> (i32, i32, i32, i32) {
    %c0_i32 = arith.constant 0 : i32
    %c0_i32_0 = arith.constant 0 : i32
    %c0_i32_1 = arith.constant 0 : i32
    return %arg1, %arg0, %c0_i32, %c0_i32_0 : i32, i32, i32, i32
  }
  func.func @transform_9(%arg0: i32, %arg1: i32) -> (i32, i32, i32, i32) {
    %c0_i32 = arith.constant 0 : i32
    %c0_i32_0 = arith.constant 0 : i32
    %c0_i32_1 = arith.constant 0 : i32
    return %arg1, %arg0, %c0_i32, %c0_i32_0 : i32, i32, i32, i32
  }
}

</mosaic_0001>

<bundles_post_ra>
// kernel: tpu_custom_call.1
= control target key start
LH: loop header
LB: loop body
LE: loop exit
PB: predicated region body
PF: predicated region fallthrough
CT: control target
= control target key end

     0   :  { %s2345_s0 = inlined_call_operand.hbm [shape: bf16[2,2,32,256], index: 0, kind: input, shape index: {}]   ;;  %s2346_s1 = inlined_call_operand.hbm [shape: bf16[32,288], index: 1, kind: input, shape index: {}]   ;;  %s2347_s2 = inlined_call_operand.vmem [shape: f32[32,1], index: 2, kind: input, shape index: {}]   ;;  %s2348_s3 = inlined_call_operand.vmem [shape: bf16[40,32], index: 3, kind: input, shape index: {}]   ;;  %s2349_s4 = inlined_call_operand.vmem [shape: f32[40,1], index: 4, kind: input, shape index: {}]   ;;  %s2350_s5 = inlined_call_operand.vmem [shape: f32[2,32,144], index: 5, kind: input, shape index: {}]   ;;  %s2351_s6 = inlined_call_operand.hbm [shape: f32[2,2,8,144], index: 6, kind: output, shape index: {0}]   ;;  %s2352_s7 = inlined_call_operand.hbm [shape: f32[2,2,32,144], index: 7, kind: output, shape index: {1}]   ;;  %s2353_s8 = inlined_call_operand.hbm [shape: f32[2,2,32,144], index: 8, kind: output, shape index: {2}]   ;;  %s2354_s9 = inlined_call_operand.hbm [shape: f32[2,2,8,144], index: 9, kind: output, shape index: {3}]  }
   0x1   :  { %2372 = sst [smem:[#allocation23_spill]] %s2346_s1 }
   0x2   :  { %2373 = sst [smem:[#allocation24_spill]] %s2350_s5 }
   0x3   :  { %2374 = sst [smem:[#allocation25_spill]] %s2351_s6 }
   0x4   :  { %2375 = sst [smem:[#allocation26_spill]] %s2352_s7 }
   0x5   :  { %2376 = sst [smem:[#allocation27_spill]] %s2353_s8 }
   0x6   :  { %2377 = sst [smem:[#allocation28_spill]] %s2354_s9 }
   0x7   :  { %15 = vsyncpa [#allocation3], 0 }
   0x8   :  { %17 = vsyncpa [#allocation3 + $0x1], 0 }
   0x9   :  { %18 = vsyncpa [#allocation6], 0 }
   0xa   :  { %19 = vsyncpa [#allocation4], 0 }
   0xb   :  { %21 = vsyncpa [#allocation4 + $0x1], 0 }
   0xc   :  { %22 = vsyncpa [#allocation9], 0 }
   0xd   :  { %24 = vsyncpa [#allocation9 + $0x1], 0 }
   0xe   :  { %25 = vsyncpa [#allocation12], 0 }
   0xf   :  { %27 = vsyncpa [#allocation12 + $0x1], 0  ;;  %s1834_s30 = smov 0   ;;  %s1836_s10 = smov 0  }
  0x10   :  { %s1838_s11 = smov 0   ;;  %s1840_s12 = smov 0  }
  0x11   :  { %s1842_s13 = smov 0   ;;  %s1844_s14 = smov 0  }
  0x12   :  { %s1846_s15 = smov 0   ;;  %s1848_s16 = smov 0  }
  0x13 LB: > { %2378 = sst [smem:[#allocation18_spill]] %s1733_s30  ;;  %s1875_s17 = sadd.s32 4294967295, %s1761_s16   ;;  %s1761_s16 = sphi %s1848_s16, %s33_s16   ;;  %s1757_s15 = sphi %s1846_s15, %s2417_s15   ;;  %s1753_s14 = sphi %s1844_s14, %s2416_s14   ;;  %s1749_s13 = sphi %s1842_s13, %s2415_s13   ;;  %s1745_s12 = sphi %s1840_s12, %s2414_s12   ;;  %s1741_s11 = sphi %s1838_s11, %s2413_s11   ;;  %s1737_s10 = sphi %s1836_s10, %s2412_s10   ;;  %s1733_s30 = sphi %s1834_s30, %s2411_s30  }
  0x14   : > { %s2355_s18 = sadd.s32 4294967294, %s1761_s16   ;;  %p67_p0 = scmp.ne.s32.totalorder %s1737_s10, %s1733_s30 }
  0x15   : > { %p2357_p1 = scmp.eq.s32.totalorder %s1875_s17, 0  ;;  %p209_p3 = scmp.eq.s32.totalorder %s2355_s18, 3 }
  0x16   : > { %p1282_p5 = scmp.ge.s32.totalorder %s1761_s16, 1  ;;  %p300_p7 = scmp.lt.s32.totalorder %s1761_s16, 5 }
  0x17   : > { %p1886_p4 = por %p2357_p1, %p67_p0  ;;  %p1891_p6 = por %p209_p3, %p67_p0 }
  0x18   : > { %p1896_p8 = pnand %p1282_p5, %p300_p7  ;;  %s1763_s22 = smov [#allocation5]  }
  0x19   : > { %s2379_s19 = scalar_select %p1886_p4, 1, 0 }
  0x1a   : > { %s2380_s20 = scalar_select %p1891_p6, 1, 0 }
  0x1b   : > { %s2382_s21 = scalar_select %p1896_p8, 1, 0 }
  0x1c   : > { %2381 = sst [smem:[#allocation19_spill]] %s2380_s20  ;;  %s312_s23 = sshll.u32 %s1763_s22, 4  ;;  %s313_s23 = int_to_ptr.vmem [resolvable:$true] %s312_s23 }
  0x1d   : > { %p1369_p9 = pneg %p1896_p8  ;;  %s2384_s1 = sld [smem:[#allocation23_spill]] }
  0x1f   : > { %p1904_p10 = pnand %p1369_p9, %p2357_p1 }
  0x21   : > { %p1511_p12 = pneg %p1904_p10 }
  0x23   : > { %s1509_s27 = scalar_lea.hbm %s2384_s1, 768 }
  0x24   : > { %p1510_p11 = scmp.ne.s32.totalorder %s2384_s1, %s1509_s27  ;;  %p1516_p3 = scmp.lt.u32.totalorder %s1509_s27, %s2384_s1 }
  0x26   : > { %p1512_p13 = pnand %p1511_p12, %p1510_p11 }
  0x28   : > { %p1513_p0 = pneg %p1512_p13 }
  0x2a   : > { %p1518_p5 = pnand %p1516_p3, %p1513_p0 }
  0x2c   : > { %1521 = shalt.err (!%p1518_p5)
}
  0x2d   : > { %s1522_s20 = scalar_lea.vmem %s313_s23, 768  ;;  %p1530_p2 = scmp.lt.s32.totalorder %s313_s23, %s313_s23 }
  0x2e   : > { %p1523_p7 = scmp.ne.s32.totalorder %s313_s23, %s1522_s20  ;;  %p1531_p6 = scmp.lt.s32.totalorder %s1522_s20, %s1522_s20 }
  0x30   : > { %p1525_p9 = pnand %p1523_p7, %p1511_p12  ;;  %p1532_p4 = por %p1531_p6, %p1530_p2 }
  0x32   : > { %p1526_p1 = pneg %p1525_p9 }
  0x34   : > { %p1533_p8 = pnand %p1532_p4, %p1526_p1 }
  0x36   : > { %1536 = shalt.err (!%p1533_p8)
}
  0x37   : > { %s1764_s25 = smov 192   ;;  %s1765_s18 = smov 12  }
  0x38   : > { %1372 = dma.hbm_to_vmem [thread:$0]  (!%p1904_p10), %s2384_s1, 768, %s313_s23, [#allocation6], %s1764_s25, %s1764_s25, %s1765_s18  }
  0x39   : > { %s42_s20 = sadd.s32 1, %s1753_s14  ;;  %s45_s28 = sadd.s32 1, %s1757_s15 }
  0x3a   : > { %p43_p1 = scmp.ge.s32.totalorder %s42_s20, 2  ;;  %s54_s29 = sadd.s32 1, %s1741_s11 }
  0x3b   : > { %p61_p2 = scmp.ne.s32.totalorder %s1741_s11, %s1737_s10  ;;  %p62_p4 = scmp.eq.s32.totalorder %s1761_s16, 0 }
  0x3c   : > { %s2419_s20 = smov (%p43_p1, %s42_s20), 0  ;;  %s2421_s28 = smov (!%p43_p1, %s45_s28), %s1757_s15 }
  0x3d   : > { %2385 = sst [smem:[#allocation20_spill]] %s2419_s20  ;;  %s49_s22 = ssub.s32 %s1753_s14, %s2419_s20 }
  0x3e   : > { %p47_p6 = scmp.ge.s32.totalorder %s2421_s28, 2  ;;  %p2386_p8 = scmp.eq.s32.totalorder %s1875_s17, 3 }
  0x3f   : > { %p1941_p10 = por %p62_p4, %p61_p2  ;;  %p1391_p12 = scmp.lt.s32.totalorder %s1761_s16, 4 }
  0x40   : > { %p1937_p11 = por %p2386_p8, %p61_p2  ;;  %s2423_s28 = smov (%p47_p6, %s2421_s28), 0 }
  0x41   : > { %2390 = sst [smem:[#allocation22_spill]] %s2423_s28  ;;  %s335_s25 = sand.u32 1, %s1741_s11  }
  0x42   : > { %s2387_s24 = scalar_select %p1937_p11, 1, 0 }
  0x43   : > { %s1286_s18 = sshll.u32 %s1757_s15, 3  ;;  %s50_s26 = ssub.s32 %s1757_s15, %s2423_s28 }
  0x44   : > { %2388 = sst [smem:[#allocation21_spill]] %s2387_s24  ;;  %s51_s27 = sor.u32 %s50_s26, %s49_s22 }
  0x45   : > { %s1285_s1 = sshll.u32 %s335_s25, 5  ;;  %p52_p13 = scmp.eq.s32.totalorder %s51_s27, 0 }
  0x46   : > { %s1287_s20 = sshll.u32 %s1753_s14, 4  ;;  %s339_s30 = scalar_lea.vmem [#allocation2], %s1285_s1 }
  0x47   : > { %s348_s8 = sshll.u32 %s339_s30, 4  ;;  %s345_s7 = sadd.s32 %s1287_s20, %s1286_s18  ;;  %s1956_s8 = int_to_ptr.vmem [resolvable:$true] %s348_s8 }
  0x48   : > { %s1954_s9 = scalar_select %p52_p13, %s1741_s11, %s54_s29  }
  0x49   : > { %s1288_s5 = sshll.u32 %s345_s7, 6  ;;  %p1962_p0 = pnand %p1391_p12, %p1941_p10 }
  0x4a   : > { %s1969_s22 = scalar_lea.hbm %s2345_s0, %s1288_s5  ;;  %s1971_s1 = scalar_lea.sflag [#allocation3], %s335_s25 }
  0x4b   : > { %s1537_s7 = scalar_lea.hbm %s1969_s22, 512  ;;  %p1539_p5 = pneg %p1962_p0 }
  0x4c   : > { %p1538_p3 = scmp.ne.s32.totalorder %s1969_s22, %s1537_s7  ;;  %s1542_s20 = scalar_lea.hbm %s2345_s0, 2048 }
  0x4d   : > { %p1543_p1 = scmp.lt.u32.totalorder %s1969_s22, %s2345_s0  ;;  %p1544_p2 = scmp.lt.u32.totalorder %s1542_s20, %s1537_s7 }
  0x4e   : > { %p1540_p7 = pnand %p1539_p5, %p1538_p3  ;;  %p1546_p6 = scmp.lt.u32.totalorder %s1537_s7, %s1969_s22 }
  0x4f   : > { %p1545_p4 = por %p1544_p2, %p1543_p1 }
  0x50   : > { %p1541_p9 = pneg %p1540_p7 }
  0x51   : > { %p1547_p8 = por %p1546_p6, %p1545_p4 }
  0x53   : > { %p1548_p10 = pnand %p1547_p8, %p1541_p9 }
  0x55   : > { %1551 = shalt.err (!%p1548_p10)
}
  0x56   : > { %s1552_s29 = scalar_lea.vmem %s1956_s8, 512  ;;  %s1766_s23 = smov [#allocation2]  }
  0x57   : > { %p1553_p12 = scmp.ne.s32.totalorder %s1956_s8, %s1552_s29  ;;  %s1557_s25 = sshll.u32 %s1766_s23, 4  ;;  %s1558_s25 = int_to_ptr.vmem [resolvable:$false] %s1557_s25 }
  0x58   : > { %s1559_s18 = scalar_lea.vmem %s1558_s25, 1024  ;;  %p1560_p7 = scmp.lt.s32.totalorder %s1956_s8, %s1558_s25 }
  0x59   : > { %p1555_p13 = pnand %p1553_p12, %p1539_p5  ;;  %p1561_p1 = scmp.lt.s32.totalorder %s1559_s18, %s1552_s29 }
  0x5b   : > { %p1556_p3 = pneg %p1555_p13  ;;  %p1562_p2 = por %p1561_p1, %p1560_p7 }
  0x5d   : > { %p1563_p4 = pnand %p1562_p2, %p1556_p3 }
  0x5f   : > { %1566 = shalt.err (!%p1563_p4)
}
  0x60   : > { %s1767_s26 = smov 128   ;;  %s1768_s27 = smov 8  }
  0x61   : > { %1376 = dma.hbm_to_vmem [thread:$0]  (!%p1962_p0), %s1969_s22, 512, %s1956_s8, %s1971_s1, %s1767_s26, %s1767_s26, %s1768_s27  }
  0x62   : > { %p2392_p5 = scmp.ne.s32.totalorder %s2382_s21, 0 }
  0x63   : > { %s2002_s7 = sand.u32 (!%p2392_p5), 1, %s1737_s10   ;;  %p2393_p9 = scmp.ne.s32.totalorder (!%p2392_p5), %s2379_s19, 0 }
  0x64   : > { %368 = sbr.rel (%p2392_p5) target bundleno = 836 (0x344), region = 44  ;;  %s1290_s30 = sshll.u32 (!%p2392_p5), %s2002_s7, 5 }
  0x65   : > { %s371_s6 = scalar_lea.sflag (!%p2392_p5), [#allocation3], %s2002_s7  ;;  %s374_s20 = scalar_lea.vmem (!%p2392_p5), [#allocation2], %s1290_s30 }
  0x6b   : > { %1712 = dma.done.wait (%p2393_p9), %s371_s6, 512  }
  0x6c   : > { %1714 = vsyncadd (%p2393_p9), %s371_s6, 4294966784  ;;  %p2394_p6 = scmp.eq.s32.totalorder %s1875_s17, 0 }
  0x6e   : > { %1716 = dma.done.wait (%p2394_p6), [#allocation6], 768   ;;  %p2395_p0 = pmov %p2394_p6 }
  0x6f   : > { %v1476_v0 = vld [vmem:[%s374_s20 + $0x10] ss:$8 sps:$4 sm:$0xff]   ;;  %v1478_v1 = vld [vmem:[%s374_s20] ss:$8 sps:$4 sm:$0xff]   ;;  %s1769_s8 = smov 127   ;;  %s1770_s19 = smov 126  }
  0x70   : > { %1718 = vsyncadd (%p2395_p0), [#allocation6], 4294966528  ;;  %467 = vrot.lane.b32.xlu1 %v1476_v0, %s1769_s8  ;;  %v1480_v2 = vld [vmem:[%s374_s20 + $0x14] ss:$8 sps:$4 sm:$0xff]   ;;  %v1481_v3 = vld [vmem:[%s374_s20 + $0x4] ss:$8 sps:$4 sm:$0xff]   ;;  %463 = vrot.lane.b32.xlu0 %v1478_v1, %s1769_s8 }
  0x71   : > { %652 = vmatprep.subr.bf16.mxu0 %v1481_v3  ;;  %s1771_s21 = smov 110   ;;  %s1772_s24 = smov 109   ;;  %v1484_v4 = vld [vmem:[#allocation5 + $0x4] ss:$12 sps:$4 sm:$0xff]   ;;  %v1776_v5 = vmov 0   ;;  %v592_v6 = vld [vmem:[%s2347_s2 + $0x8] sm:$0xff] }
  0x72   : > { %653 = vmatpush1.bf16.msra.mxu0 %v1478_v1  ;;  %s1773_s22 = smov 108   ;;  %s1774_s1 = smov 92   ;;  %684 = vmatprep.mubr.bf16.mxu0 %v1484_v4  ;;  %v591_v7 = vld [vmem:[%s2347_s2] sm:$0xff]  ;;  %v593_v8 = vld [vmem:[%s2347_s2 + $0x10] sm:$0xff]  ;;  %v594_v9 = vld [vmem:[%s2347_s2 + $0x18] sm:$0xff]  ;;  %vm471_vm0 = vcmask 1039360  }
  0x73   : > { %654 = vmatprep.subr.bf16.mxu0 %v1480_v2  ;;  %s1775_s5 = smov 91   ;;  %737 = vmatprep.mubr.bf16.mxu1 %v1776_v5  ;;  %s1777_s28 = smov 90   ;;  %v775_v10 = vld [vmem:[%s2349_s4] sm:$0xff]  ;;  %v778_v11 = vld [vmem:[%s2349_s4 + $0x18] sm:$0xff]  ;;  %v776_v13 = vld [vmem:[%s2349_s4 + $0x8] sm:$0xff]  ;;  %vm486_vm1 = vcmask 1031168  }
  0x74   : > { %469 = vrot.lane.b32.xlu1 %v1480_v2, %s1769_s8  ;;  %465 = vrot.lane.b32.xlu0 %v1481_v3, %s1769_s8  ;;  %v779_v12 = vld [vmem:[%s2349_s4 + $0x20] sm:$0xff]  ;;  %v777_v14 = vld [vmem:[%s2349_s4 + $0x10] sm:$0xff]  ;;  %vm501_vm2 = vcmask 900096   ;;  %vm516_vm3 = vcmask 891904   ;;  %vm531_vm4 = vcmask 883712   ;;  %vm546_vm5 = vcmask 752640  }
  0x75   : > { %1475 = vset.pattern.permute.xlu1 %v1776_v5  ;;  %1474 = vset.pattern.permute.xlu0 %v1776_v5  ;;  %vm561_vm6 = vcmask 744448   ;;  %vm576_vm7 = vcmask 736256   ;;  %v1482_v60 = vld [vmem:[#allocation5] ss:$12 sps:$4 sm:$0xff]   ;;  %v1486_v61 = vld [vmem:[#allocation5 + $0x1c] ss:$12 sps:$4 sm:$0xff]  }
  0x76   : > { %655 = vmatpush1.bf16.msra.mxu0 %v1476_v0  ;;  %vm645_vm8 = vcmask 261120   ;;  %s1324_s6 = sshll.u32 %s1749_s13, 1  ;;  %s1325_s20 = sshll.u32 %s1745_s12, 2  ;;  %vm889_vm9 = vcmask 130048  }
  0x77   : > { %s2371_s8 = sshll.u32 %s2002_s7, 4  ;;  %p433_p8 = scmp.lt.s32.totalorder %s1749_s13, 1 }
  0x78   : > { %480 = vrot.lane.b32.xlu1 %v1481_v3, %s1770_s19  ;;  %478 = vrot.lane.b32.xlu0 %v1478_v1, %s1770_s19  ;;  %s2396_s23 = sld [smem:[#allocation25_spill]]  ;;  %s986_s30 = scalar_lea.sflag [#allocation4], %s2002_s7 }
  0x7c   : > { %484 = vrot.lane.b32.xlu1 %v1480_v2, %s1770_s19  ;;  %482 = vrot.lane.b32.xlu0 %v1476_v0, %s1770_s19  ;;  %s2070_s19 = sadd.s32 %s1325_s20, %s1324_s6  ;;  %s1778_s20 = smov [#allocation7]  }
  0x80   : > { %495 = vrot.lane.b32.xlu1 %v1481_v3, %s1771_s21  ;;  %493 = vrot.lane.b32.xlu0 %v1478_v1, %s1771_s21 }
  0x84   : > { %499 = vrot.lane.b32.xlu1 %v1480_v2, %s1771_s21  ;;  %497 = vrot.lane.b32.xlu0 %v1476_v0, %s1771_s21  ;;  %s2369_s21 = sshll.u32 %s2002_s7, 6 }
  0x85   : > { %s2098_s27 = scalar_lea.vmem [#allocation8], %s2369_s21 }
  0x88   : > { %510 = vrot.lane.b32.xlu1 %v1481_v3, %s1772_s24  ;;  %508 = vrot.lane.b32.xlu0 %v1478_v1, %s1772_s24 }
  0x8c   : > { %514 = vrot.lane.b32.xlu1 %v1480_v2, %s1772_s24  ;;  %512 = vrot.lane.b32.xlu0 %v1476_v0, %s1772_s24  ;;  %s2370_s24 = sshll.u32 %s2070_s19, 7 }
  0x8d   : > { %s2086_s25 = scalar_lea.hbm %s2396_s23, %s2370_s24 }
  0x90   : > { %525 = vrot.lane.b32.xlu1 %v1481_v3, %s1773_s22  ;;  %523 = vrot.lane.b32.xlu0 %v1478_v1, %s1773_s22 }
  0x94   : > { %529 = vrot.lane.b32.xlu1 %v1480_v2, %s1773_s22  ;;  %527 = vrot.lane.b32.xlu0 %v1476_v0, %s1773_s22  ;;  %s411_s22 = scalar_lea.vmem [#allocation7], %s2371_s8 }
  0x98   : > { %540 = vrot.lane.b32.xlu1 %v1481_v3, %s1774_s1  ;;  %538 = vrot.lane.b32.xlu0 %v1478_v1, %s1774_s1 }
  0x9c   : > { %544 = vrot.lane.b32.xlu1 %v1480_v2, %s1774_s1  ;;  %542 = vrot.lane.b32.xlu0 %v1476_v0, %s1774_s1  ;;  %s1017_s1 = sshll.u32 %s411_s22, 4  ;;  %s2088_s1 = int_to_ptr.vmem [resolvable:$true] %s1017_s1 }
  0x9d   : > { %s1567_s6 = scalar_lea.vmem %s2088_s1, 256 }
  0x9e   : > { %p1568_p10 = scmp.ne.s32.totalorder %s2088_s1, %s1567_s6 }
  0xa0   : > { %555 = vrot.lane.b32.xlu1 %v1481_v3, %s1775_s5  ;;  %553 = vrot.lane.b32.xlu0 %v1478_v1, %s1775_s5  ;;  %p1569_p12 = pnand %p1568_p10, %p1937_p11 }
  0xa2   : > { %p1570_p13 = pneg %p1569_p12 }
  0xa4   : > { %570 = vrot.lane.b32.xlu1 %v1481_v3, %s1777_s28  ;;  %568 = vrot.lane.b32.xlu0 %v1478_v1, %s1777_s28  ;;  %v1485_v1 = vld [vmem:[#allocation5 + $0x8] ss:$12 sps:$4 sm:$0xff]   ;;  %v1489_v3 = vld [vmem:[#allocation5 + $0x20] ss:$12 sps:$4 sm:$0xff]  }
  0xa8   : > { %559 = vrot.lane.b32.xlu1 %v1480_v2, %s1775_s5  ;;  %557 = vrot.lane.b32.xlu0 %v1476_v0, %s1775_s5  ;;  %s2077_s5 = scalar_select %p433_p8, %s1749_s13, 1 }
  0xaa   : > { %s1338_s26 = sshll.u32 %s2077_s5, 6 }
  0xac   : > { %574 = vrot.lane.b32.xlu1 %v1480_v2, %s1777_s28  ;;  %572 = vrot.lane.b32.xlu0 %v1476_v0, %s1777_s28  ;;  %v1488_v2 = vld [vmem:[#allocation5 + $0x18] ss:$12 sps:$4 sm:$0xff]   ;;  %s1571_s28 = sshll.u32 %s1778_s20, 4  ;;  %s1572_s28 = int_to_ptr.vmem [resolvable:$false] %s1571_s28 }
  0xad   : > { %s1573_s29 = scalar_lea.vmem %s1572_s28, 512  ;;  %p1574_p3 = scmp.lt.s32.totalorder %s2088_s1, %s1572_s28 }
  0xae   : > { %p1575_p7 = scmp.lt.s32.totalorder %s1573_s29, %s1567_s6 }
  0xb0   : > { %602 = vperm.xlu1 %1475, %v592_v6   ;;  %597 = vperm.xlu0 %1474, %v591_v7   ;;  %p1576_p1 = por %p1575_p7, %p1574_p3 }
  0xb2   : > { %p1577_p2 = pnand %p1576_p1, %p1570_p13 }
  0xb4   : > { %607 = vperm.xlu1 %1475, %v593_v8   ;;  %612 = vperm.xlu0 %1474, %v594_v9  }
  0xb8   : > { %782 = vperm.xlu1 %1475, %v775_v10   ;;  %797 = vperm.xlu0 %1474, %v778_v11  }
  0xbc   : > { %802 = vperm.xlu1 %1475, %v779_v12   ;;  %787 = vperm.xlu0 %1474, %v776_v13  }
  0xc0   : > { %792 = vperm.xlu1 %1475, %v777_v14  }
  0xe2   : > { %v468_v15 = vpop.permute.xlu1 %467  ;;  %v464_v16 = vpop.permute.xlu0 %463 }
  0xe6   : > { %v470_v17 = vpop.permute.xlu1 %469  ;;  %v466_v18 = vpop.permute.xlu0 %465 }
  0xe7   : > { %656 = vmatprep.subr.bf16.mxu0 %v466_v18  ;;  %v472_v19 = vsel %vm471_vm0, %v464_v16, %v466_v18  ;;  %v473_v22 = vsel %vm471_vm0, %v468_v15, %v470_v17 }
  0xe8   : > { %657 = vmatpush1.bf16.msra.mxu0 %v472_v19 }
  0xe9   : > { %658 = vmatprep.subr.bf16.mxu0 %v470_v17 }
  0xea   : > { %v481_v20 = vpop.permute.xlu1 %480  ;;  %v479_v21 = vpop.permute.xlu0 %478 }
  0xeb   : > { %v487_v25 = vsel %vm486_vm1, %v479_v21, %v481_v20 }
  0xec   : > { %659 = vmatpush1.bf16.msra.mxu0 %v473_v22 }
  0xed   : > { %660 = vmatprep.subr.bf16.mxu0 %v481_v20 }
  0xee   : > { %v485_v23 = vpop.permute.xlu1 %484  ;;  %v483_v24 = vpop.permute.xlu0 %482 }
  0xef   : > { %v488_v28 = vsel %vm486_vm1, %v483_v24, %v485_v23 }
  0xf0   : > { %661 = vmatpush1.bf16.msra.mxu0 %v487_v25 }
  0xf1   : > { %662 = vmatprep.subr.bf16.mxu0 %v485_v23 }
  0xf2   : > { %v496_v26 = vpop.permute.xlu1 %495  ;;  %v494_v27 = vpop.permute.xlu0 %493 }
  0xf3   : > { %v502_v31 = vsel %vm501_vm2, %v494_v27, %v496_v26 }
  0xf4   : > { %663 = vmatpush1.bf16.msra.mxu0 %v488_v28 }
  0xf5   : > { %664 = vmatprep.subr.bf16.mxu0 %v496_v26 }
  0xf6   : > { %v500_v29 = vpop.permute.xlu1 %499  ;;  %v498_v30 = vpop.permute.xlu0 %497 }
  0xf7   : > { %v503_v34 = vsel %vm501_vm2, %v498_v30, %v500_v29 }
  0xf8   : > { %665 = vmatpush1.bf16.msra.mxu0 %v502_v31 }
  0xf9   : > { %666 = vmatprep.subr.bf16.mxu0 %v500_v29 }
  0xfa   : > { %v511_v32 = vpop.permute.xlu1 %510  ;;  %v509_v33 = vpop.permute.xlu0 %508 }
  0xfb   : > { %v517_v37 = vsel %vm516_vm3, %v509_v33, %v511_v32 }
  0xfc   : > { %667 = vmatpush1.bf16.msra.mxu0 %v503_v34 }
  0xfd   : > { %668 = vmatprep.subr.bf16.mxu0 %v511_v32 }
  0xfe   : > { %v515_v35 = vpop.permute.xlu1 %514  ;;  %v513_v36 = vpop.permute.xlu0 %512 }
  0xff   : > { %v518_v40 = vsel %vm516_vm3, %v513_v36, %v515_v35 }
 0x100   : > { %669 = vmatpush1.bf16.msra.mxu0 %v517_v37 }
 0x101   : > { %670 = vmatprep.subr.bf16.mxu0 %v515_v35 }
 0x102   : > { %v526_v38 = vpop.permute.xlu1 %525  ;;  %v524_v39 = vpop.permute.xlu0 %523 }
 0x103   : > { %v532_v43 = vsel %vm531_vm4, %v524_v39, %v526_v38 }
 0x104   : > { %671 = vmatpush1.bf16.msra.mxu0 %v518_v40 }
 0x105   : > { %672 = vmatprep.subr.bf16.mxu0 %v526_v38 }
 0x106   : > { %v530_v41 = vpop.permute.xlu1 %529  ;;  %v528_v42 = vpop.permute.xlu0 %527 }
 0x107   : > { %v533_v46 = vsel %vm531_vm4, %v528_v42, %v530_v41 }
 0x108   : > { %673 = vmatpush1.bf16.msra.mxu0 %v532_v43 }
 0x109   : > { %674 = vmatprep.subr.bf16.mxu0 %v530_v41 }
 0x10a   : > { %v541_v44 = vpop.permute.xlu1 %540  ;;  %v539_v45 = vpop.permute.xlu0 %538 }
 0x10b   : > { %v547_v49 = vsel %vm546_vm5, %v539_v45, %v541_v44 }
 0x10c   : > { %675 = vmatpush1.bf16.msra.mxu0 %v533_v46 }
 0x10d   : > { %676 = vmatprep.subr.bf16.mxu0 %v541_v44 }
 0x10e   : > { %v545_v47 = vpop.permute.xlu1 %544  ;;  %v543_v48 = vpop.permute.xlu0 %542 }
 0x10f   : > { %v548_v52 = vsel %vm546_vm5, %v543_v48, %v545_v47 }
 0x110   : > { %677 = vmatpush1.bf16.msra.mxu0 %v547_v49 }
 0x111   : > { %678 = vmatprep.subr.bf16.mxu0 %v545_v47 }
 0x112   : > { %v556_v50 = vpop.permute.xlu1 %555  ;;  %v554_v51 = vpop.permute.xlu0 %553 }
 0x113   : > { %v562_v55 = vsel %vm561_vm6, %v554_v51, %v556_v50 }
 0x114   : > { %679 = vmatpush1.bf16.msra.mxu0 %v548_v52 }
 0x115   : > { %680 = vmatprep.subr.bf16.mxu0 %v556_v50 }
 0x116   : > { %v571_v53 = vpop.permute.xlu1 %570  ;;  %v569_v54 = vpop.permute.xlu0 %568 }
 0x117   : > { %705 = vmatprep.subr.bf16.mxu1 %v571_v53  ;;  %v577_v56 = vsel %vm576_vm7, %v569_v54, %v571_v53  ;;  %v1490_v53 = vld [vmem:[%s2348_s3] sm:$0xff]   ;;  %v1491_v54 = vld [vmem:[%s2348_s3 + $0x8] sm:$0xff]  }
 0x118   : > { %681 = vmatpush1.bf16.msra.mxu0 %v562_v55  ;;  %706 = vmatpush1.bf16.msra.mxu1 %v577_v56  ;;  %v1492_v55 = vld [vmem:[%s2348_s3 + $0x10] ss:$0 sps:$4 sm:$0xff]  }
 0x11a   : > { %v560_v57 = vpop.permute.xlu1 %559  ;;  %v558_v58 = vpop.permute.xlu0 %557 }
 0x11b   : > { %682 = vmatprep.subr.bf16.mxu0 %v560_v57  ;;  %v563_v59 = vsel %vm561_vm6, %v558_v58, %v560_v57 }
 0x11c   : > { %683 = vmatpush1.bf16.msra.mxu0 %v563_v59 }
 0x11e   : > { %v575_v62 = vpop.permute.xlu1 %574  ;;  %v573_v63 = vpop.permute.xlu0 %572 }
 0x11f   : > { %707 = vmatprep.subr.bf16.mxu1 %v575_v62  ;;  %685 = vmatmul.mubr.bf16.vlgmr.msra.gmra.mrb[0].mxu0 %v1482_v60  ;;  %v578_v0 = vsel %vm576_vm7, %v573_v63, %v575_v62 }
 0x120   : > { %708 = vmatpush1.bf16.msra.mxu1 %v578_v0  ;;  %694 = vmatprep.mubr.bf16.mxu0 %v1486_v61 }
 0x123   : > { %1308 = vmatmul.mubr.msk.bf16.vlgmr.msra.gmra.mrb[0].mxu1 %vm645_vm8, %v1485_v1 }
 0x124   : > { %747 = vmatprep.mubr.bf16.mxu1 %v1776_v5 }
 0x127   : > { %695 = vmatmul.mubr.bf16.gmra.mrb[4].mxu0 %v1488_v2 }
 0x12b   : > { %1309 = vmatmul.mubr.msk.bf16.gmra.mrb[4].mxu1 %vm645_vm8, %v1489_v3 }
 0x12c   : > { %859 = vmatprep.mubr.bf16.mxu1 %v1776_v5 }
 0x12f   : > { %v598_v4 = vpop.permute.xlu0 %597  ;;  %v603_v9 = vpop.permute.xlu1 %602 }
 0x133   : > { %v608_v22 = vpop.permute.xlu1 %607  ;;  %v613_v34 = vpop.permute.xlu0 %612 }
 0x137   : > { %v783_v56 = vpop.permute.xlu1 %782  ;;  %v2067_v57 = vpop.permute.xlu0 %797 }
 0x13b   : > { %v2079_v58 = vpop.permute.xlu1 %802  ;;  %v788_v61 = vpop.permute.xlu0 %787 }
 0x1f2   : > { %v686_v6 = vpop.f32.mrb[0].mxu0 }
 0x1f3   : > { %v687_v7 = vadd.f32 %v686_v6, %v598_v4  ;;  %v688_v8 = vpop.f32.mrb[1].mxu0 }
 0x1f4   : > { %v689_v10 = vadd.f32 %v688_v8, %v598_v4  ;;  %v690_v11 = vpop.f32.mrb[2].mxu0 }
 0x1f5   : > { %v692_v12 = vpop.f32.mrb[3].mxu0  ;;  %v691_v14 = vadd.f32 %v690_v11, %v603_v9 }
 0x1f6   : > { %v739_v13 = vpop.f32.mrb[0].mxu1  ;;  %v693_v17 = vadd.f32 %v692_v12, %v603_v9 }
 0x1f7   : > { %v740_v15 = vadd.f32 %v739_v13, %v687_v7  ;;  %v741_v16 = vpop.f32.mrb[1].mxu1 }
 0x1f8   : > { %v742_v18 = vadd.f32 %v741_v16, %v689_v10  ;;  %v743_v19 = vpop.f32.mrb[2].mxu1 }
 0x1f9   : > { %v744_v20 = vadd.f32 %v743_v19, %v691_v14  ;;  %v745_v21 = vpop.f32.mrb[3].mxu1  ;;  %v758_v25 = vmax.f32 %v740_v15, 0.0 }
 0x1fa   : > { %v746_v23 = vadd.f32 %v745_v21, %v693_v17  ;;  %v696_v24 = vpop.f32.mrb[4].mxu0  ;;  %v759_v29 = vmax.f32 %v742_v18, 0.0 }
 0x1fb   : > { %v760_v26 = vmax.f32 %v744_v20, 0.0  ;;  %v697_v27 = vadd.f32 %v696_v24, %v608_v22  ;;  %v698_v28 = vpop.f32.mrb[5].mxu0 }
 0x1fc   : > { %v761_v30 = vmax.f32 %v746_v23, 0.0  ;;  %v700_v31 = vpop.f32.mrb[6].mxu0  ;;  %v699_v36 = vadd.f32 %v698_v28, %v608_v22 }
 0x1fd   : > { %v766_v32 = vpack.c.bf16 %v760_v26, %v758_v25  ;;  %v702_v33 = vpop.f32.mrb[7].mxu0  ;;  %v701_v38 = vadd.f32 %v700_v31, %v613_v34 }
 0x1fe   : > { %v767_v35 = vpack.c.bf16 %v761_v30, %v759_v29  ;;  %v749_v37 = vpop.f32.mrb[4].mxu1  ;;  %v703_v41 = vadd.f32 %v702_v33, %v613_v34 }
 0x1ff   : > { %v750_v39 = vadd.f32 %v749_v37, %v697_v27  ;;  %v751_v40 = vpop.f32.mrb[5].mxu1 }
 0x200   : > { %v752_v42 = vadd.f32 %v751_v40, %v699_v36  ;;  %v753_v43 = vpop.f32.mrb[6].mxu1  ;;  %827 = vmatprep.subr.bf16.mxu1 %v767_v35 }
 0x201   : > { %v754_v44 = vadd.f32 %v753_v43, %v701_v38  ;;  %v755_v45 = vpop.f32.mrb[7].mxu1  ;;  %828 = vmatpush1.bf16.msra.mxu1 %v766_v32  ;;  %v762_v47 = vmax.f32 %v750_v39, 0.0 }
 0x202   : > { %v756_v46 = vadd.f32 %v755_v45, %v703_v41  ;;  %v763_v49 = vmax.f32 %v752_v42, 0.0 }
 0x203   : > { %v764_v48 = vmax.f32 %v754_v44, 0.0 }
 0x204   : > { %v765_v50 = vmax.f32 %v756_v46, 0.0 }
 0x205   : > { %v768_v51 = vpack.c.bf16 %v764_v48, %v762_v47 }
 0x206   : > { %v769_v52 = vpack.c.bf16 %v765_v50, %v763_v49 }
 0x208   : > { %829 = vmatprep.subr.bf16.mxu1 %v769_v52 }
 0x209   : > { %830 = vmatpush1.bf16.msra.mxu1 %v768_v51 }
 0x20c   : > { %1313 = vmatmul.mubr.msk.bf16.vlgmr.msra.gmra.mrb[8].mxu1 %vm645_vm8, %v1490_v53 }
 0x20d   : > { %869 = vmatprep.mubr.bf16.mxu1 %v1776_v5 }
 0x214   : > { %1314 = vmatmul.mubr.msk.bf16.gmra.mrb[12].mxu1 %vm645_vm8, %v1491_v54 }
 0x215   : > { %879 = vmatprep.mubr.bf16.mxu1 %v1776_v5 }
 0x21c   : > { %1315 = vmatmul.mubr.msk.bf16.gmra.mrb[16].mxu1 %vm645_vm8, %v1492_v55 }
 0x2df   : > { %v861_v5 = vpop.f32.mrb[8].mxu1 }
 0x2e0   : > { %v862_v59 = vadd.f32 %v861_v5, %v783_v56  ;;  %v863_v60 = vpop.f32.mrb[9].mxu1 }
 0x2e1   : > { %v864_v62 = vadd.f32 %v863_v60, %v783_v56  ;;  %v865_v63 = vpop.f32.mrb[10].mxu1 }
 0x2e2   : > { %888 = vst [vmem:[%s411_s22] sm:$0xff] %v862_v59  ;;  %v891_v0 = vsub.f32 0.0, %v862_v59  ;;  %v2090_v1 = vadd.f32 %v865_v63, %v788_v61  ;;  %v867_v2 = vpop.f32.mrb[11].mxu1 }
 0x2e3   : > { %v892_v3 = vsub.f32 0.0, %v864_v62  ;;  %v2093_v4 = vadd.f32 %v867_v2, %v788_v61  ;;  %890 = vst.msk [vmem:[%s411_s22 + $0x8] sm:$0xff] %vm889_vm9, %v864_v62 }
 0x2e4   : > { %v893_v6 = vmul.f32 1.442695, %v891_v0  ;;  %905 = vst [vmem:[%s2098_s27] sm:$0xff] %v2090_v1 }
 0x2e5   : > { %1580 = shalt.err (!%p1577_p2)
}
 0x2e6   : > { %s1581_s22 = scalar_lea.hbm %s2086_s25, 256  ;;  %s1585_s20 = scalar_lea.hbm %s2396_s23, 1024 }
 0x2e7   : > { %p1582_p4 = scmp.ne.s32.totalorder %s2086_s25, %s1581_s22  ;;  %p1586_p6 = scmp.lt.u32.totalorder %s2086_s25, %s2396_s23 }
 0x2e8   : > { %p1587_p0 = scmp.lt.u32.totalorder %s1585_s20, %s1581_s22  ;;  %p1589_p10 = scmp.lt.u32.totalorder %s1581_s22, %s2086_s25 }
 0x2e9   : > { %p1583_p5 = pnand %p1582_p4, %p1937_p11 }
 0x2ea   : > { %p1588_p8 = por %p1587_p0, %p1586_p6 }
 0x2eb   : > { %p1584_p9 = pneg %p1583_p5 }
 0x2ec   : > { %p1590_p12 = por %p1589_p10, %p1588_p8 }
 0x2ee   : > { %p1591_p13 = pnand %p1590_p12, %p1584_p9 }
 0x2f0   : > { %1594 = shalt.err (!%p1591_p13)
}
 0x2f1   : > { %1361 = dma.vmem_to_hbm [thread:$0]  (%p1937_p11), %s2088_s1, 256, %s2086_s25, %s986_s30   ;;  %v895_v7 = vmul.f32 1.442695, %v892_v3  ;;  %906 = vst.msk [vmem:[%s2098_s27 + $0x8] sm:$0xff] %vm889_vm9, %v2093_v4  ;;  %1493 = vpow2.f32 %v893_v6  ;;  %v793_v8 = vpop.permute.xlu1 %792  ;;  %v871_v9 = vpop.f32.mrb[12].mxu1 }
 0x2f2   : > { %s2398_s24 = sld [smem:[#allocation24_spill]]  ;;  %s1327_s1 = sshll.u32 %s1749_s13, 3  ;;  %v2136_v10 = vadd.f32 %v871_v9, %v793_v8  ;;  %v873_v11 = vpop.f32.mrb[13].mxu1 }
 0x2f3   : > { %1495 = vpow2.f32 %v895_v7  ;;  %s1328_s25 = sshll.u32 %s1745_s12, 4  ;;  %v2142_v14 = vadd.f32 %v873_v11, %v793_v8  ;;  %v875_v15 = vpop.f32.mrb[14].mxu1  ;;  %s1032_s12 = sshll.u32 %s2098_s27, 4  ;;  %s2165_s12 = int_to_ptr.vmem [resolvable:$true] %s1032_s12 }
 0x2f4   : > { %907 = vst [vmem:[%s2098_s27 + $0x10] sm:$0xff] %v2136_v10  ;;  %v876_v16 = vadd.f32 %v875_v15, %v2067_v57  ;;  %v877_v17 = vpop.f32.mrb[15].mxu1  ;;  %s2147_s13 = sadd.s32 %s1328_s25, %s1327_s1  ;;  %s990_s5 = sand.u32 1, %s1875_s17  }
 0x2f5   : > { %908 = vst.msk [vmem:[%s2098_s27 + $0x18] sm:$0xff] %vm889_vm9, %v2142_v14  ;;  %v878_v20 = vadd.f32 %v877_v17, %v2067_v57  ;;  %v881_v27 = vpop.f32.mrb[16].mxu1  ;;  %s2399_s22 = sld [smem:[#allocation26_spill]]  ;;  %s2193_s28 = scalar_lea.sflag [#allocation9], %s990_s5 }
 0x2f6   : > { %909 = vst [vmem:[%s2098_s27 + $0x20] sm:$0xff] %v876_v16  ;;  %v921_v22 = vmin.f32 %v876_v16, 4.1351666  ;;  %v882_v32 = vadd.f32 %v881_v27, %v2079_v58  ;;  %v883_v33 = vpop.f32.mrb[17].mxu1  ;;  %s1595_s8 = scalar_lea.vmem %s2165_s12, 1024  ;;  %s1779_s21 = smov [#allocation8]  }
 0x2f7   : > { %910 = vst.msk [vmem:[%s2098_s27 + $0x28] sm:$0xff] %vm889_vm9, %v878_v20  ;;  %v922_v23 = vmin.f32 %v878_v20, 4.1351666  ;;  %v884_v38 = vadd.f32 %v883_v33, %v2079_v58  ;;  %v885_v39 = vpop.f32.mrb[18].mxu1  ;;  %p1596_p3 = scmp.ne.s32.totalorder %s2165_s12, %s1595_s8 }
 0x2f8   : > { %s2132_s6 = scalar_lea.vmem %s2398_s24, %s1338_s26  ;;  %s1329_s26 = sshll.u32 %s2147_s13, 7  ;;  %v949_v25 = vmul.f32 1.442695, %v921_v22  ;;  %911 = vst [vmem:[%s2098_s27 + $0x30] sm:$0xff] %v882_v32  ;;  %v923_v42 = vmin.f32 %v882_v32, 4.1351666 }
 0x2f9   : > { %v2139_v12 = vld [vmem:[%s2132_s6] sm:$0xff]  ;;  %v2150_v18 = vld [vmem:[%s2132_s6 + $0x8] sm:$0xff]  ;;  %v951_v26 = vmul.f32 1.442695, %v922_v23  ;;  %v2170_v30 = vld [vmem:[%s2132_s6 + $0x10] sm:$0xff]  ;;  %v886_v43 = vpop.f32.mrb[19].mxu1  ;;  %p1597_p7 = pnand %p1596_p3, %p1937_p11 }
 0x2fa   : > { %v917_v13 = vld [vmem:[%s2132_s6 + $0x20] sm:$0xff]  ;;  %v918_v19 = vld [vmem:[%s2132_s6 + $0x28] sm:$0xff]  ;;  %v919_v31 = vld [vmem:[%s2132_s6 + $0x30] sm:$0xff]  ;;  %1497 = vpow2.f32 %v949_v25  ;;  %912 = vst.msk [vmem:[%s2098_s27 + $0x38] sm:$0xff] %vm889_vm9, %v884_v38  ;;  %v924_v45 = vmin.f32 %v884_v38, 4.1351666 }
 0x2fb   : > { %v925_v21 = vsub.f32 %v917_v13, %v2139_v12  ;;  %v926_v24 = vsub.f32 %v918_v19, %v2150_v18  ;;  %v1494_v28 = vpop.eup %1493  ;;  %s2179_s20 = scalar_lea.hbm %s2399_s22, %s1329_s26  ;;  %v2182_v36 = vld [vmem:[%s2132_s6 + $0x18] sm:$0xff]  ;;  %1499 = vpow2.f32 %v951_v26  ;;  %v929_v44 = vsub.f32 %v919_v31, %v2170_v30  ;;  %p1598_p1 = pneg %p1597_p7 }
 0x2fc   : > { %v897_v35 = vadd.f32 1.0, %v1494_v28  ;;  %v920_v37 = vld [vmem:[%s2132_s6 + $0x38] sm:$0xff]  ;;  %v955_v47 = vmul.f32 1.442695, %v923_v42  ;;  %s1599_s24 = sshll.u32 %s1779_s21, 4  ;;  %s1600_s24 = int_to_ptr.vmem [resolvable:$false] %s1599_s24 }
 0x2fd   : > { %v2167_v29 = vadd.f32 1.0, %v925_v21  ;;  %v1496_v34 = vpop.eup %1495  ;;  %v928_v41 = vadd.f32 1.0, %v926_v24  ;;  %v930_v46 = vsub.f32 %v920_v37, %v2182_v36  ;;  %s1601_s6 = scalar_lea.vmem %s1600_s24, 2048  ;;  %p1602_p2 = scmp.lt.s32.totalorder %s2165_s12, %s1600_s24 }
 0x2fe   : > { %v898_v40 = vadd.f32 1.0, %v1496_v34  ;;  %1501 = vrcp.f32 %v897_v35  ;;  %p1603_p4 = scmp.lt.s32.totalorder %s1601_s6, %s1595_s8 }
 0x300   : > { %1503 = vrcp.f32 %v898_v40  ;;  %p1604_p5 = por %p1603_p4, %p1602_p2 }
 0x302   : > { %p1605_p9 = pnand %p1604_p5, %p1598_p1 }
 0x304   : > { %1608 = shalt.err (!%p1605_p9)
}
 0x305   : > { %s1609_s17 = scalar_lea.hbm %s2179_s20, 1024  ;;  %s1613_s25 = scalar_lea.hbm %s2399_s22, 4096 }
 0x306   : > { %p1610_p6 = scmp.ne.s32.totalorder %s2179_s20, %s1609_s17  ;;  %p1614_p10 = scmp.lt.u32.totalorder %s2179_s20, %s2399_s22 }
 0x307   : > { %p1615_p12 = scmp.lt.u32.totalorder %s1613_s25, %s1609_s17  ;;  %p1617_p3 = scmp.lt.u32.totalorder %s1609_s17, %s2179_s20 }
 0x308   : > { %p1611_p0 = pnand %p1610_p6, %p1937_p11 }
 0x309   : > { %p1616_p13 = por %p1615_p12, %p1614_p10 }
 0x30a   : > { %p1612_p8 = pneg %p1611_p0 }
 0x30b   : > { %p1618_p7 = por %p1617_p3, %p1616_p13 }
 0x30d   : > { %p1619_p1 = pnand %p1618_p7, %p1612_p8 }
 0x30f   : > { %1622 = shalt.err (!%p1619_p1)
}
 0x310   : > { %s1780_s29 = smov 256   ;;  %s1781_s8 = smov 16   ;;  %v933_v48 = vmul.f32 0.5, %v2167_v29  ;;  %v957_v49 = vmul.f32 1.442695, %v924_v45  ;;  %v934_v50 = vmul.f32 0.5, %v928_v41  ;;  %1505 = vpow2.f32 %v955_v47  ;;  %v1498_v55 = vpop.eup %1497 }
 0x311   : > { %1362 = dma.vmem_to_hbm [thread:$0]  (%p1937_p11), %s2165_s12, 1024, %s2179_s20, %s2193_s28, %s1780_s29, %s1780_s29, %s1781_s8   ;;  %v2221_v51 = vadd.f32 1.0, %v929_v44  ;;  %v2223_v52 = vadd.f32 1.0, %v930_v46  ;;  %v941_v54 = vmul.f32 %v2167_v29, %v2090_v1  ;;  %v942_v57 = vmul.f32 %v928_v41, %v2093_v4  ;;  %v1500_v5 = vpop.eup %1499 }
 0x312   : > { %1507 = vpow2.f32 %v957_v49  ;;  %v935_v53 = vadd.f32 %v933_v48, %v2139_v12  ;;  %v936_v56 = vadd.f32 %v934_v50, %v2150_v18  ;;  %s2400_s12 = sshll.u32 %s2002_s7, 4  ;;  %v953_v59 = vmul.f32 %v1498_v55, %v2167_v29  ;;  %v1502_v62 = vpop.eup %1501  ;;  %s2401_s24 = sshll.u32 %s2070_s19, 7 }
 0x313   : > { %s432_s20 = scalar_lea.vmem [#allocation11], %s2400_s12  ;;  %v937_v58 = vmul.f32 0.5, %v2221_v51  ;;  %v938_v60 = vmul.f32 0.5, %v2223_v52  ;;  %v954_v61 = vmul.f32 %v1500_v5, %v928_v41  ;;  %s2402_s27 = sld [smem:[#allocation28_spill]]  ;;  %v1504_v1 = vpop.eup %1503  ;;  %v945_v6 = vmul.f32 %v2221_v51, %v2136_v10 }
 0x314   : > { %s1069_s21 = sshll.u32 %s432_s20, 4  ;;  %v943_v63 = vadd.f32 %v941_v54, %v935_v53  ;;  %v961_v0 = vmul.f32 0.5, %v953_v59  ;;  %903 = vst [vmem:[%s432_s20] sm:$0xff] %v1502_v62  ;;  %v944_v2 = vadd.f32 %v942_v57, %v936_v56  ;;  %904 = vst.msk [vmem:[%s432_s20 + $0x8] sm:$0xff] %vm889_vm9, %v1504_v1  ;;  %v946_v12 = vmul.f32 %v2223_v52, %v2142_v14  ;;  %s1001_s19 = scalar_lea.sflag [#allocation12], %s2002_s7  ;;  %s2242_s21 = int_to_ptr.vmem [resolvable:$true] %s1069_s21 }
 0x315   : > { %v962_v3 = vmul.f32 0.5, %v954_v61  ;;  %v939_v4 = vadd.f32 %v937_v58, %v2170_v30  ;;  %v940_v11 = vadd.f32 %v938_v60, %v2182_v36  ;;  %s1623_s25 = scalar_lea.vmem %s2242_s21, 256  ;;  %s1782_s5 = smov [#allocation11]  }
 0x316   : > { %v963_v7 = vsub.f32 %v943_v63, %v961_v0  ;;  %v969_v8 = vadd.f32 %v961_v0, %v943_v63  ;;  %p1624_p2 = scmp.ne.s32.totalorder %s2242_s21, %s1623_s25  ;;  %s1627_s30 = sshll.u32 %s1782_s5, 4  ;;  %s1628_s30 = int_to_ptr.vmem [resolvable:$false] %s1627_s30 }
 0x317   : > { %v964_v13 = vsub.f32 %v944_v2, %v962_v3  ;;  %v970_v15 = vadd.f32 %v962_v3, %v944_v2  ;;  %s1629_s12 = scalar_lea.vmem %s1628_s30, 512  ;;  %p1630_p9 = scmp.lt.s32.totalorder %s2242_s21, %s1628_s30 }
 0x318   : > { %p1625_p4 = pnand %p1624_p2, %p1937_p11  ;;  %p1631_p6 = scmp.lt.s32.totalorder %s1629_s12, %s1623_s25 }
 0x319   : > { %s2240_s1 = scalar_lea.hbm %s2402_s27, %s2401_s24 }
 0x31a   : > { %v1506_v9 = vpop.eup %1505  ;;  %p1626_p5 = pneg %p1625_p4  ;;  %p1632_p0 = por %p1631_p6, %p1630_p9 }
 0x31c   : > { %p1633_p8 = pnand %p1632_p0, %p1626_p5 }
 0x31e   : > { %1636 = shalt.err (!%p1633_p8)
}
 0x31f   : > { %s1637_s20 = scalar_lea.hbm %s2240_s1, 256  ;;  %s1641_s17 = scalar_lea.hbm %s2402_s27, 1024 }
 0x320   : > { %p1638_p10 = scmp.ne.s32.totalorder %s2240_s1, %s1637_s20  ;;  %p1642_p3 = scmp.lt.u32.totalorder %s2240_s1, %s2402_s27 }
 0x321   : > { %p1643_p7 = scmp.lt.u32.totalorder %s1641_s17, %s1637_s20  ;;  %p1645_p2 = scmp.lt.u32.totalorder %s1637_s20, %s2240_s1 }
 0x322   : > { %p1639_p12 = pnand %p1638_p10, %p1937_p11 }
 0x323   : > { %p1644_p1 = por %p1643_p7, %p1642_p3 }
 0x324   : > { %p1640_p13 = pneg %p1639_p12 }
 0x325   : > { %p1646_p4 = por %p1645_p2, %p1644_p1 }
 0x327   : > { %p1647_p5 = pnand %p1646_p4, %p1640_p13 }
 0x329   : > { %1650 = shalt.err (!%p1647_p5)
}
 0x32a   : > { %1364 = dma.vmem_to_hbm [thread:$0]  (%p1937_p11), %s2242_s21, 256, %s2240_s1, %s1001_s19   ;;  %v1508_v10 = vpop.eup %1507  ;;  %v1316_v14 = vadd.f32 -1.0, %v969_v8  ;;  %v959_v16 = vmul.f32 %v1506_v9, %v2221_v51  ;;  %v1317_v17 = vadd.f32 -1.0, %v970_v15  ;;  %v947_v19 = vadd.f32 %v945_v6, %v939_v4 }
 0x32b   : > { %s2403_s25 = sshll.u32 %s2002_s7, 6  ;;  %v960_v18 = vmul.f32 %v1508_v10, %v2223_v52  ;;  %v948_v21 = vadd.f32 %v946_v12, %v940_v11  ;;  %s2404_s19 = sld [smem:[#allocation27_spill]] }
 0x32c   : > { %s425_s12 = scalar_lea.vmem [#allocation10], %s2403_s25  ;;  %v965_v20 = vmul.f32 0.5, %v959_v16  ;;  %s1783_s6 = smov [#allocation10]  }
 0x32d   : > { %977 = vst [vmem:[%s425_s12] sm:$0xff] %v963_v7  ;;  %978 = vst.msk [vmem:[%s425_s12 + $0x8] sm:$0xff] %vm889_vm9, %v964_v13  ;;  %v966_v22 = vmul.f32 0.5, %v960_v18  ;;  %s1050_s21 = sshll.u32 %s425_s12, 4  ;;  %s1655_s17 = sshll.u32 %s1783_s6, 4  ;;  %s2279_s21 = int_to_ptr.vmem [resolvable:$true] %s1050_s21  ;;  %s1656_s17 = int_to_ptr.vmem [resolvable:$false] %s1655_s17 }
 0x32e   : > { %981 = vst [vmem:[%s425_s12 + $0x20] sm:$0xff] %v1316_v14  ;;  %982 = vst.msk [vmem:[%s425_s12 + $0x28] sm:$0xff] %vm889_vm9, %v1317_v17  ;;  %v967_v23 = vsub.f32 %v947_v19, %v965_v20  ;;  %v973_v24 = vadd.f32 %v965_v20, %v947_v19  ;;  %s1651_s24 = scalar_lea.vmem %s2279_s21, 1024  ;;  %s1657_s5 = scalar_lea.vmem %s1656_s17, 2048 }
 0x32f   : > { %v968_v25 = vsub.f32 %v948_v21, %v966_v22  ;;  %v974_v26 = vadd.f32 %v966_v22, %v948_v21  ;;  %p1652_p9 = scmp.ne.s32.totalorder %s2279_s21, %s1651_s24  ;;  %p1658_p8 = scmp.lt.s32.totalorder %s2279_s21, %s1656_s17 }
 0x330   : > { %v1318_v27 = vadd.f32 -1.0, %v973_v24  ;;  %979 = vst [vmem:[%s425_s12 + $0x10] sm:$0xff] %v967_v23  ;;  %p1659_p10 = scmp.lt.s32.totalorder %s1657_s5, %s1651_s24 }
 0x331   : > { %v1319_v28 = vadd.f32 -1.0, %v974_v26  ;;  %980 = vst.msk [vmem:[%s425_s12 + $0x18] sm:$0xff] %vm889_vm9, %v968_v25  ;;  %s2287_s20 = scalar_lea.hbm %s2404_s19, %s1329_s26  ;;  %p1653_p6 = pnand %p1652_p9, %p1937_p11 }
 0x332   : > { %983 = vst [vmem:[%s425_s12 + $0x30] sm:$0xff] %v1318_v27  ;;  %p1660_p12 = por %p1659_p10, %p1658_p8 }
 0x333   : > { %984 = vst.msk [vmem:[%s425_s12 + $0x38] sm:$0xff] %vm889_vm9, %v1319_v28  ;;  %p1654_p0 = pneg %p1653_p6 }
 0x335   : > { %p1661_p13 = pnand %p1660_p12, %p1654_p0 }
 0x337   : > { %1664 = shalt.err (!%p1661_p13)
}
 0x338   : > { %s1665_s13 = scalar_lea.hbm %s2287_s20, 1024  ;;  %s1669_s25 = scalar_lea.hbm %s2404_s19, 4096 }
 0x339   : > { %p1666_p3 = scmp.ne.s32.totalorder %s2287_s20, %s1665_s13  ;;  %p1670_p2 = scmp.lt.u32.totalorder %s2287_s20, %s2404_s19 }
 0x33a   : > { %p1671_p4 = scmp.lt.u32.totalorder %s1669_s25, %s1665_s13  ;;  %p1673_p9 = scmp.lt.u32.totalorder %s1665_s13, %s2287_s20 }
 0x33b   : > { %p1667_p7 = pnand %p1666_p3, %p1937_p11 }
 0x33c   : > { %p1672_p5 = por %p1671_p4, %p1670_p2 }
 0x33d   : > { %p1668_p1 = pneg %p1667_p7 }
 0x33e   : > { %p1674_p6 = por %p1673_p9, %p1672_p5 }
 0x340   : > { %p1675_p0 = pnand %p1674_p6, %p1668_p1 }
 0x342   : > { %1678 = shalt.err (!%p1675_p0)
}
 0x343   : > { %1363 = dma.vmem_to_hbm [thread:$0]  (%p1937_p11), %s2279_s21, 1024, %s2287_s20, %s2193_s28, %s1780_s29, %s1780_s29, %s1781_s8  }
 0x344 PF: > { %s2405_s1 = sld [smem:[#allocation18_spill]]  ;;  %s2406_s24 = sld [smem:[#allocation19_spill]] }
 0x345   : > { %p1393_p8 = scmp.ge.s32.totalorder %s1761_s16, 2 }
 0x34a   : > { %s1081_s6 = sand.u32 1, %s2405_s1   ;;  %p2407_p10 = scmp.ne.s32.totalorder %s2406_s24, 0 }
 0x34b   : > { %s1082_s17 = scalar_lea.sflag [#allocation4], %s1081_s6 }
 0x34c   : > { %p1378_p12 = pnand %p1393_p8, %p2407_p10 }
 0x34e   : > { %1720 = dma.done.wait (!%p1378_p12), %s1082_s17, 256  }
 0x34f   : > { %1722 = vsyncadd (!%p1378_p12), %s1082_s17, 4294967040  ;;  %s2408_s18 = sadd.s32 4294967294, %s1761_s16  }
 0x350   : > { %s1090_s5 = sand.u32 1, %s2408_s18  }
 0x351   : > { %s1091_s13 = scalar_lea.sflag [#allocation9], %s1090_s5 }
 0x352   : > { %1724 = dma.done.wait (!%p1378_p12), %s1091_s13, 2048  }
 0x353   : > { %1726 = vsyncadd (!%p1378_p12), %s1091_s13, 4294965248  ;;  %s1109_s26 = scalar_lea.sflag [#allocation12], %s1081_s6 }
 0x354   : > { %1728 = dma.done.wait (!%p1378_p12), %s1109_s26, 256  }
 0x355   : > { %1730 = vsyncadd (!%p1378_p12), %s1109_s26, 4294967040  ;;  %s33_s16 = sadd.s32 1, %s1761_s16   ;;  %s2409_s28 = sld [smem:[#allocation20_spill]] }
 0x356   : > { %p30_p11 = scmp.ge.s32.totalorder %s33_s16, 6   ;;  %s2410_s29 = sld [smem:[#allocation22_spill]] }
 0x357   : > { %s2411_s30 = smov %s1737_s10  ;;  %s2412_s10 = smov %s1741_s11 }
 0x358   : > { %s2413_s11 = smov %s1954_s9  ;;  %s2414_s12 = smov %s1753_s14 }
 0x359   : > { %s2415_s13 = smov %s1757_s15  ;;  %32 = sbr.rel (!%p30_p11) target bundleno = 19 (0x13), region = 145 }
 0x35b   : > { %s2416_s14 = smov %s2409_s28 }
 0x35c   : > { %s2417_s15 = smov %s2410_s29 }
 0x360   :  { %1114 = vsyncpa [#allocation3], 1 }
 0x361   :  { %1116 = vsyncpa [#allocation3 + $0x1], 1 }
 0x362   :  { %1117 = vsyncpa [#allocation6], 1 }
 0x363   :  { %1118 = vsyncpa [#allocation4], 1 }
 0x364   :  { %1120 = vsyncpa [#allocation4 + $0x1], 1 }
 0x365   :  { %1121 = vsyncpa [#allocation9], 1 }
 0x366   :  { %1123 = vsyncpa [#allocation9 + $0x1], 1 }
 0x367   :  { %1124 = vsyncpa [#allocation12], 1 }
 0x368   :  { %1126 = vsyncpa [#allocation12 + $0x1], 1 }

</bundles_post_ra>
